<compile_context>
chip_gen: v6e
topology: v6e:2x2x1
jax: 0.10.0
libtpu: 0.0.40
codegen_flags: <defaults>
</compile_context>

<pallas_src>
import jax
import jax.numpy as jnp
from jax.experimental import pallas as pl
from jax.experimental.pallas import tpu as pltpu

_N_SLOTS = 32  # outstanding row DMAs per core (power of two for the & mask)


def _gather_kernel(ids_ref, tab_hbm, out_ref, sems):
    """Gather rows of `tab_hbm` (HBM) into the current output tile (VMEM).

    ids_ref : SMEM (N,) int32        -- scalar-prefetched row ids (all rows)
    tab_hbm : ANY/HBM (V, D) float32 -- embedding table, never auto-DMA'd
    out_ref : VMEM (TN, D) float32   -- output tile for this grid step
    sems    : DMA semaphores, shape (_N_SLOTS,)
    """
    tn = out_ref.shape[0]
    n_ids = ids_ref.shape[0]
    vmax = tab_hbm.shape[0] - 1
    base = pl.program_id(0) * tn

    def _clamp(x):
        # torch.nn.Embedding raises on out-of-range ids; a DMA gather would
        # read an arbitrary row instead, so clamp defensively (in-range ids
        # are unaffected).  Scalar min/max ride the scalar ALU slot for free.
        return jnp.minimum(jnp.maximum(x, 0), vmax)

    def _copy(row, out_i, slot):
        return pltpu.make_async_copy(
            tab_hbm.at[pl.ds(row, 1)],      # (1, D) row in HBM
            out_ref.at[pl.ds(out_i, 1)],    # (1, D) row of the output tile
            sems.at[slot],
        )

    # Prime the pipeline with up to _N_SLOTS outstanding row copies.
    for i in range(min(_N_SLOTS, tn)):
        _copy(_clamp(ids_ref[base + i]), i, i).start()

    # Steady state: wait for row i, immediately refill its slot with row
    # i + _N_SLOTS so ~_N_SLOTS copies stay in flight.
    @pl.loop(0, tn)
    def _(i):
        slot = i & (_N_SLOTS - 1)

        # Read SMEM ids BEFORE the wait: .wait() breaks SMEM sst->sld
        # forwarding, so reads placed after it stall every iteration.
        cur_row = _clamp(ids_ref[base + i])                # row that fills output row i
        refill = i + _N_SLOTS
        safe_idx = jnp.minimum(base + refill, n_ids - 1)   # guard SMEM OOB read
        nxt_row = _clamp(ids_ref[safe_idx])

        # Wait on the exact descriptor that was issued for output row i.
        _copy(cur_row, i, slot).wait()

        @pl.when(refill < tn)
        def _():
            _copy(nxt_row, refill, slot).start()


def _tensorcores_per_device():
    """Best-effort TensorCore count behind one JAX device (1 or 2)."""
    try:
        dev = jax.devices()[0]
    except Exception:
        return 1
    n = getattr(dev, "num_cores", None)
    if isinstance(n, int) and n > 0:
        return n
    kind = str(getattr(dev, "device_kind", "")).lower()
    return 2 if any(t in kind for t in ("v4", "v5p", "v7", "7x")) else 1


def _pick_row_tile(n, cores):
    """Row-tile size: full extent on 1-TC chips; even grid split on multi-TC."""
    if cores <= 1:
        return n  # grid=1: pay the DMA pipeline drain exactly once
    best = None
    for tn in range(n, 0, -1):
        if n % tn:
            continue
        if (n // tn) % cores == 0 and tn % 8 == 0:
            best = tn
            break
    return best if best is not None else n


def embedding_lookup(indices, table):
    """nn.Embedding forward: table[indices]; indices any int shape, table (V, D)."""
    V, D = table.shape
    assert V < 2**31, "vocab must fit in int32"
    assert D % 128 == 0, "embedding dim must be a multiple of 128 lanes"

    # Raw ids go straight to the kernel; clamping happens on the in-kernel
    # scalar read (no separate XLA clip op).  int64 ids are narrowed to int32.
    ids = indices.reshape(-1).astype(jnp.int32)
    N = int(ids.shape[0])

    cores = _tensorcores_per_device()
    tn = _pick_row_tile(N, cores)

    out = pl.pallas_call(
        _gather_kernel,
        out_shape=jax.ShapeDtypeStruct((N, D), table.dtype),
        grid_spec=pltpu.PrefetchScalarGridSpec(
            num_scalar_prefetch=1,
            grid=(N // tn,),
            in_specs=[pl.BlockSpec(memory_space=pl.ANY)],   # table stays in HBM
            out_specs=pl.BlockSpec((tn, D), lambda t, ids: (t, 0)),
            scratch_shapes=[pltpu.SemaphoreType.DMA((_N_SLOTS,))],
        ),
        compiler_params=pltpu.CompilerParams(
            dimension_semantics=("parallel",)),  # row tiles are independent
    )(ids, table)

    return out.reshape(indices.shape + (D,))


if __name__ == "__main__":
    # Small, shape-consistent stand-ins for Embedding(250002, 768) on [1, 384]:
    VOCAB = 2048      # stands in for 250002 (keeps the in-script table small)
    DIM = 768         # real embedding dim (multiple of 128)
    B, S = 1, 384     # real index shape
    PADDING_IDX = 1

    key = jax.random.PRNGKey(0)
    k_w, k_i = jax.random.split(key)

    # Deterministic embedding weight; row `padding_idx` zeroed, as nn.Embedding does.
    weight = jax.random.normal(k_w, (VOCAB, DIM), dtype=jnp.float32) * 0.02
    weight = weight.at[PADDING_IDX].set(0.0)

    # Deterministic index tensor (torch used a constant int64 tensor; kernel uses int32 ids).
    indices = jax.random.randint(k_i, (B, S), 0, VOCAB, dtype=jnp.int32)
    indices = indices.at[0, 0].set(PADDING_IDX)  # exercise the padding row

    out = jax.block_until_ready(embedding_lookup(indices, weight))

    # Reference check against a plain gather (DMA gather is an exact copy).
    ref = jnp.take(weight, indices, axis=0)
    assert out.shape == (B, S, DIM)
    assert jnp.allclose(out, ref, atol=0.0), "mismatch vs reference gather"
    assert jnp.all(out[0, 0] == 0.0), "padding_idx row must be zero"

    print("KERNEL_OK")
</pallas_src>

<mosaic_0001>
module attributes {stable_mosaic.version = 11 : i64} {
  func.func @_gather_kernel(%arg0: i32, %arg1: memref<384xi32, #tpu.memory_space<smem>>, %arg2: memref<2048x768xf32, #tpu.memory_space<any>>, %arg3: memref<384x768xf32, #tpu.memory_space<vmem>>, %arg4: memref<32x!tpu.dma_semaphore, #tpu.memory_space<semaphore_mem>>) attributes {dimension_semantics = [#tpu.dimension_semantics<parallel>], iteration_bounds = array<i64: 1>, scalar_prefetch = 1 : i64, scratch_operands = 1 : i64, tpu.core_type = #tpu.core_type<tc>, window_params = [{}, {transform_indices = @transform_1, window_bounds = array<i64: 384, 768>}]} {
    %c384_i32 = arith.constant 384 : i32
    %0 = arith.muli %arg0, %c384_i32 : i32
    %c0_i32 = arith.constant 0 : i32
    %1 = arith.addi %0, %c0_i32 : i32
    %2 = arith.index_cast %1 : i32 to index
    %3 = memref.load %arg1[%2] : memref<384xi32, #tpu.memory_space<smem>>
    %c0_i32_0 = arith.constant 0 : i32
    %4 = arith.maxsi %3, %c0_i32_0 : i32
    %c2047_i32 = arith.constant 2047 : i32
    %5 = arith.minsi %4, %c2047_i32 : i32
    %c0_i32_1 = arith.constant 0 : i32
    %c0_i32_2 = arith.constant 0 : i32
    %6 = tpu.memref_slice %arg2[%5, %c0_i32_2] : memref<2048x768xf32, #tpu.memory_space<any>> -> memref<1x768xf32, #tpu.memory_space<any>>
    %c0_i32_3 = arith.constant 0 : i32
    %c0_i32_4 = arith.constant 0 : i32
    %7 = tpu.memref_slice %arg3[%c0_i32_3, %c0_i32_4] : memref<384x768xf32, #tpu.memory_space<vmem>> -> memref<1x768xf32, #tpu.memory_space<vmem>>
    %8 = tpu.memref_slice %arg4[%c0_i32_1] : memref<32x!tpu.dma_semaphore, #tpu.memory_space<semaphore_mem>> -> memref<1x!tpu.dma_semaphore, #tpu.memory_space<semaphore_mem>>
    %9 = tpu.memref_squeeze %8 : memref<1x!tpu.dma_semaphore, #tpu.memory_space<semaphore_mem>> -> memref<!tpu.dma_semaphore, #tpu.memory_space<semaphore_mem>>
    tpu.enqueue_dma source(%6 : memref<1x768xf32, #tpu.memory_space<any>>) target(%7 : memref<1x768xf32, #tpu.memory_space<vmem>>) target_semaphore(%9 : memref<!tpu.dma_semaphore, #tpu.memory_space<semaphore_mem>>)
    %c1_i32 = arith.constant 1 : i32
    %10 = arith.addi %0, %c1_i32 : i32
    %11 = arith.index_cast %10 : i32 to index
    %12 = memref.load %arg1[%11] : memref<384xi32, #tpu.memory_space<smem>>
    %c0_i32_5 = arith.constant 0 : i32
    %13 = arith.maxsi %12, %c0_i32_5 : i32
    %c2047_i32_6 = arith.constant 2047 : i32
    %14 = arith.minsi %13, %c2047_i32_6 : i32
    %c1_i32_7 = arith.constant 1 : i32
    %c0_i32_8 = arith.constant 0 : i32
    %15 = tpu.memref_slice %arg2[%14, %c0_i32_8] : memref<2048x768xf32, #tpu.memory_space<any>> -> memref<1x768xf32, #tpu.memory_space<any>>
    %c1_i32_9 = arith.constant 1 : i32
    %c0_i32_10 = arith.constant 0 : i32
    %16 = tpu.memref_slice %arg3[%c1_i32_9, %c0_i32_10] : memref<384x768xf32, #tpu.memory_space<vmem>> -> memref<1x768xf32, #tpu.memory_space<vmem>>
    %17 = tpu.memref_slice %arg4[%c1_i32_7] : memref<32x!tpu.dma_semaphore, #tpu.memory_space<semaphore_mem>> -> memref<1x!tpu.dma_semaphore, #tpu.memory_space<semaphore_mem>>
    %18 = tpu.memref_squeeze %17 : memref<1x!tpu.dma_semaphore, #tpu.memory_space<semaphore_mem>> -> memref<!tpu.dma_semaphore, #tpu.memory_space<semaphore_mem>>
    tpu.enqueue_dma source(%15 : memref<1x768xf32, #tpu.memory_space<any>>) target(%16 : memref<1x768xf32, #tpu.memory_space<vmem>>) target_semaphore(%18 : memref<!tpu.dma_semaphore, #tpu.memory_space<semaphore_mem>>)
    %c2_i32 = arith.constant 2 : i32
    %19 = arith.addi %0, %c2_i32 : i32
    %20 = arith.index_cast %19 : i32 to index
    %21 = memref.load %arg1[%20] : memref<384xi32, #tpu.memory_space<smem>>
    %c0_i32_11 = arith.constant 0 : i32
    %22 = arith.maxsi %21, %c0_i32_11 : i32
    %c2047_i32_12 = arith.constant 2047 : i32
    %23 = arith.minsi %22, %c2047_i32_12 : i32
    %c2_i32_13 = arith.constant 2 : i32
    %c0_i32_14 = arith.constant 0 : i32
    %24 = tpu.memref_slice %arg2[%23, %c0_i32_14] : memref<2048x768xf32, #tpu.memory_space<any>> -> memref<1x768xf32, #tpu.memory_space<any>>
    %c2_i32_15 = arith.constant 2 : i32
    %c0_i32_16 = arith.constant 0 : i32
    %25 = tpu.memref_slice %arg3[%c2_i32_15, %c0_i32_16] : memref<384x768xf32, #tpu.memory_space<vmem>> -> memref<1x768xf32, #tpu.memory_space<vmem>>
    %26 = tpu.memref_slice %arg4[%c2_i32_13] : memref<32x!tpu.dma_semaphore, #tpu.memory_space<semaphore_mem>> -> memref<1x!tpu.dma_semaphore, #tpu.memory_space<semaphore_mem>>
    %27 = tpu.memref_squeeze %26 : memref<1x!tpu.dma_semaphore, #tpu.memory_space<semaphore_mem>> -> memref<!tpu.dma_semaphore, #tpu.memory_space<semaphore_mem>>
    tpu.enqueue_dma source(%24 : memref<1x768xf32, #tpu.memory_space<any>>) target(%25 : memref<1x768xf32, #tpu.memory_space<vmem>>) target_semaphore(%27 : memref<!tpu.dma_semaphore, #tpu.memory_space<semaphore_mem>>)
    %c3_i32 = arith.constant 3 : i32
    %28 = arith.addi %0, %c3_i32 : i32
    %29 = arith.index_cast %28 : i32 to index
    %30 = memref.load %arg1[%29] : memref<384xi32, #tpu.memory_space<smem>>
    %c0_i32_17 = arith.constant 0 : i32
    %31 = arith.maxsi %30, %c0_i32_17 : i32
    %c2047_i32_18 = arith.constant 2047 : i32
    %32 = arith.minsi %31, %c2047_i32_18 : i32
    %c3_i32_19 = arith.constant 3 : i32
    %c0_i32_20 = arith.constant 0 : i32
    %33 = tpu.memref_slice %arg2[%32, %c0_i32_20] : memref<2048x768xf32, #tpu.memory_space<any>> -> memref<1x768xf32, #tpu.memory_space<any>>
    %c3_i32_21 = arith.constant 3 : i32
    %c0_i32_22 = arith.constant 0 : i32
    %34 = tpu.memref_slice %arg3[%c3_i32_21, %c0_i32_22] : memref<384x768xf32, #tpu.memory_space<vmem>> -> memref<1x768xf32, #tpu.memory_space<vmem>>
    %35 = tpu.memref_slice %arg4[%c3_i32_19] : memref<32x!tpu.dma_semaphore, #tpu.memory_space<semaphore_mem>> -> memref<1x!tpu.dma_semaphore, #tpu.memory_space<semaphore_mem>>
    %36 = tpu.memref_squeeze %35 : memref<1x!tpu.dma_semaphore, #tpu.memory_space<semaphore_mem>> -> memref<!tpu.dma_semaphore, #tpu.memory_space<semaphore_mem>>
    tpu.enqueue_dma source(%33 : memref<1x768xf32, #tpu.memory_space<any>>) target(%34 : memref<1x768xf32, #tpu.memory_space<vmem>>) target_semaphore(%36 : memref<!tpu.dma_semaphore, #tpu.memory_space<semaphore_mem>>)
    %c4_i32 = arith.constant 4 : i32
    %37 = arith.addi %0, %c4_i32 : i32
    %38 = arith.index_cast %37 : i32 to index
    %39 = memref.load %arg1[%38] : memref<384xi32, #tpu.memory_space<smem>>
    %c0_i32_23 = arith.constant 0 : i32
    %40 = arith.maxsi %39, %c0_i32_23 : i32
    %c2047_i32_24 = arith.constant 2047 : i32
    %41 = arith.minsi %40, %c2047_i32_24 : i32
    %c4_i32_25 = arith.constant 4 : i32
    %c0_i32_26 = arith.constant 0 : i32
    %42 = tpu.memref_slice %arg2[%41, %c0_i32_26] : memref<2048x768xf32, #tpu.memory_space<any>> -> memref<1x768xf32, #tpu.memory_space<any>>
    %c4_i32_27 = arith.constant 4 : i32
    %c0_i32_28 = arith.constant 0 : i32
    %43 = tpu.memref_slice %arg3[%c4_i32_27, %c0_i32_28] : memref<384x768xf32, #tpu.memory_space<vmem>> -> memref<1x768xf32, #tpu.memory_space<vmem>>
    %44 = tpu.memref_slice %arg4[%c4_i32_25] : memref<32x!tpu.dma_semaphore, #tpu.memory_space<semaphore_mem>> -> memref<1x!tpu.dma_semaphore, #tpu.memory_space<semaphore_mem>>
    %45 = tpu.memref_squeeze %44 : memref<1x!tpu.dma_semaphore, #tpu.memory_space<semaphore_mem>> -> memref<!tpu.dma_semaphore, #tpu.memory_space<semaphore_mem>>
    tpu.enqueue_dma source(%42 : memref<1x768xf32, #tpu.memory_space<any>>) target(%43 : memref<1x768xf32, #tpu.memory_space<vmem>>) target_semaphore(%45 : memref<!tpu.dma_semaphore, #tpu.memory_space<semaphore_mem>>)
    %c5_i32 = arith.constant 5 : i32
    %46 = arith.addi %0, %c5_i32 : i32
    %47 = arith.index_cast %46 : i32 to index
    %48 = memref.load %arg1[%47] : memref<384xi32, #tpu.memory_space<smem>>
    %c0_i32_29 = arith.constant 0 : i32
    %49 = arith.maxsi %48, %c0_i32_29 : i32
    %c2047_i32_30 = arith.constant 2047 : i32
    %50 = arith.minsi %49, %c2047_i32_30 : i32
    %c5_i32_31 = arith.constant 5 : i32
    %c0_i32_32 = arith.constant 0 : i32
    %51 = tpu.memref_slice %arg2[%50, %c0_i32_32] : memref<2048x768xf32, #tpu.memory_space<any>> -> memref<1x768xf32, #tpu.memory_space<any>>
    %c5_i32_33 = arith.constant 5 : i32
    %c0_i32_34 = arith.constant 0 : i32
    %52 = tpu.memref_slice %arg3[%c5_i32_33, %c0_i32_34] : memref<384x768xf32, #tpu.memory_space<vmem>> -> memref<1x768xf32, #tpu.memory_space<vmem>>
    %53 = tpu.memref_slice %arg4[%c5_i32_31] : memref<32x!tpu.dma_semaphore, #tpu.memory_space<semaphore_mem>> -> memref<1x!tpu.dma_semaphore, #tpu.memory_space<semaphore_mem>>
    %54 = tpu.memref_squeeze %53 : memref<1x!tpu.dma_semaphore, #tpu.memory_space<semaphore_mem>> -> memref<!tpu.dma_semaphore, #tpu.memory_space<semaphore_mem>>
    tpu.enqueue_dma source(%51 : memref<1x768xf32, #tpu.memory_space<any>>) target(%52 : memref<1x768xf32, #tpu.memory_space<vmem>>) target_semaphore(%54 : memref<!tpu.dma_semaphore, #tpu.memory_space<semaphore_mem>>)
    %c6_i32 = arith.constant 6 : i32
    %55 = arith.addi %0, %c6_i32 : i32
    %56 = arith.index_cast %55 : i32 to index
    %57 = memref.load %arg1[%56] : memref<384xi32, #tpu.memory_space<smem>>
    %c0_i32_35 = arith.constant 0 : i32
    %58 = arith.maxsi %57, %c0_i32_35 : i32
    %c2047_i32_36 = arith.constant 2047 : i32
    %59 = arith.minsi %58, %c2047_i32_36 : i32
    %c6_i32_37 = arith.constant 6 : i32
    %c0_i32_38 = arith.constant 0 : i32
    %60 = tpu.memref_slice %arg2[%59, %c0_i32_38] : memref<2048x768xf32, #tpu.memory_space<any>> -> memref<1x768xf32, #tpu.memory_space<any>>
    %c6_i32_39 = arith.constant 6 : i32
    %c0_i32_40 = arith.constant 0 : i32
    %61 = tpu.memref_slice %arg3[%c6_i32_39, %c0_i32_40] : memref<384x768xf32, #tpu.memory_space<vmem>> -> memref<1x768xf32, #tpu.memory_space<vmem>>
    %62 = tpu.memref_slice %arg4[%c6_i32_37] : memref<32x!tpu.dma_semaphore, #tpu.memory_space<semaphore_mem>> -> memref<1x!tpu.dma_semaphore, #tpu.memory_space<semaphore_mem>>
    %63 = tpu.memref_squeeze %62 : memref<1x!tpu.dma_semaphore, #tpu.memory_space<semaphore_mem>> -> memref<!tpu.dma_semaphore, #tpu.memory_space<semaphore_mem>>
    tpu.enqueue_dma source(%60 : memref<1x768xf32, #tpu.memory_space<any>>) target(%61 : memref<1x768xf32, #tpu.memory_space<vmem>>) target_semaphore(%63 : memref<!tpu.dma_semaphore, #tpu.memory_space<semaphore_mem>>)
    %c7_i32 = arith.constant 7 : i32
    %64 = arith.addi %0, %c7_i32 : i32
    %65 = arith.index_cast %64 : i32 to index
    %66 = memref.load %arg1[%65] : memref<384xi32, #tpu.memory_space<smem>>
    %c0_i32_41 = arith.constant 0 : i32
    %67 = arith.maxsi %66, %c0_i32_41 : i32
    %c2047_i32_42 = arith.constant 2047 : i32
    %68 = arith.minsi %67, %c2047_i32_42 : i32
    %c7_i32_43 = arith.constant 7 : i32
    %c0_i32_44 = arith.constant 0 : i32
    %69 = tpu.memref_slice %arg2[%68, %c0_i32_44] : memref<2048x768xf32, #tpu.memory_space<any>> -> memref<1x768xf32, #tpu.memory_space<any>>
    %c7_i32_45 = arith.constant 7 : i32
    %c0_i32_46 = arith.constant 0 : i32
    %70 = tpu.memref_slice %arg3[%c7_i32_45, %c0_i32_46] : memref<384x768xf32, #tpu.memory_space<vmem>> -> memref<1x768xf32, #tpu.memory_space<vmem>>
    %71 = tpu.memref_slice %arg4[%c7_i32_43] : memref<32x!tpu.dma_semaphore, #tpu.memory_space<semaphore_mem>> -> memref<1x!tpu.dma_semaphore, #tpu.memory_space<semaphore_mem>>
    %72 = tpu.memref_squeeze %71 : memref<1x!tpu.dma_semaphore, #tpu.memory_space<semaphore_mem>> -> memref<!tpu.dma_semaphore, #tpu.memory_space<semaphore_mem>>
    tpu.enqueue_dma source(%69 : memref<1x768xf32, #tpu.memory_space<any>>) target(%70 : memref<1x768xf32, #tpu.memory_space<vmem>>) target_semaphore(%72 : memref<!tpu.dma_semaphore, #tpu.memory_space<semaphore_mem>>)
    %c8_i32 = arith.constant 8 : i32
    %73 = arith.addi %0, %c8_i32 : i32
    %74 = arith.index_cast %73 : i32 to index
    %75 = memref.load %arg1[%74] : memref<384xi32, #tpu.memory_space<smem>>
    %c0_i32_47 = arith.constant 0 : i32
    %76 = arith.maxsi %75, %c0_i32_47 : i32
    %c2047_i32_48 = arith.constant 2047 : i32
    %77 = arith.minsi %76, %c2047_i32_48 : i32
    %c8_i32_49 = arith.constant 8 : i32
    %c0_i32_50 = arith.constant 0 : i32
    %78 = tpu.memref_slice %arg2[%77, %c0_i32_50] : memref<2048x768xf32, #tpu.memory_space<any>> -> memref<1x768xf32, #tpu.memory_space<any>>
    %c8_i32_51 = arith.constant 8 : i32
    %c0_i32_52 = arith.constant 0 : i32
    %79 = tpu.memref_slice %arg3[%c8_i32_51, %c0_i32_52] : memref<384x768xf32, #tpu.memory_space<vmem>> -> memref<1x768xf32, #tpu.memory_space<vmem>>
    %80 = tpu.memref_slice %arg4[%c8_i32_49] : memref<32x!tpu.dma_semaphore, #tpu.memory_space<semaphore_mem>> -> memref<1x!tpu.dma_semaphore, #tpu.memory_space<semaphore_mem>>
    %81 = tpu.memref_squeeze %80 : memref<1x!tpu.dma_semaphore, #tpu.memory_space<semaphore_mem>> -> memref<!tpu.dma_semaphore, #tpu.memory_space<semaphore_mem>>
    tpu.enqueue_dma source(%78 : memref<1x768xf32, #tpu.memory_space<any>>) target(%79 : memref<1x768xf32, #tpu.memory_space<vmem>>) target_semaphore(%81 : memref<!tpu.dma_semaphore, #tpu.memory_space<semaphore_mem>>)
    %c9_i32 = arith.constant 9 : i32
    %82 = arith.addi %0, %c9_i32 : i32
    %83 = arith.index_cast %82 : i32 to index
    %84 = memref.load %arg1[%83] : memref<384xi32, #tpu.memory_space<smem>>
    %c0_i32_53 = arith.constant 0 : i32
    %85 = arith.maxsi %84, %c0_i32_53 : i32
    %c2047_i32_54 = arith.constant 2047 : i32
    %86 = arith.minsi %85, %c2047_i32_54 : i32
    %c9_i32_55 = arith.constant 9 : i32
    %c0_i32_56 = arith.constant 0 : i32
    %87 = tpu.memref_slice %arg2[%86, %c0_i32_56] : memref<2048x768xf32, #tpu.memory_space<any>> -> memref<1x768xf32, #tpu.memory_space<any>>
    %c9_i32_57 = arith.constant 9 : i32
    %c0_i32_58 = arith.constant 0 : i32
    %88 = tpu.memref_slice %arg3[%c9_i32_57, %c0_i32_58] : memref<384x768xf32, #tpu.memory_space<vmem>> -> memref<1x768xf32, #tpu.memory_space<vmem>>
    %89 = tpu.memref_slice %arg4[%c9_i32_55] : memref<32x!tpu.dma_semaphore, #tpu.memory_space<semaphore_mem>> -> memref<1x!tpu.dma_semaphore, #tpu.memory_space<semaphore_mem>>
    %90 = tpu.memref_squeeze %89 : memref<1x!tpu.dma_semaphore, #tpu.memory_space<semaphore_mem>> -> memref<!tpu.dma_semaphore, #tpu.memory_space<semaphore_mem>>
    tpu.enqueue_dma source(%87 : memref<1x768xf32, #tpu.memory_space<any>>) target(%88 : memref<1x768xf32, #tpu.memory_space<vmem>>) target_semaphore(%90 : memref<!tpu.dma_semaphore, #tpu.memory_space<semaphore_mem>>)
    %c10_i32 = arith.constant 10 : i32
    %91 = arith.addi %0, %c10_i32 : i32
    %92 = arith.index_cast %91 : i32 to index
    %93 = memref.load %arg1[%92] : memref<384xi32, #tpu.memory_space<smem>>
    %c0_i32_59 = arith.constant 0 : i32
    %94 = arith.maxsi %93, %c0_i32_59 : i32
    %c2047_i32_60 = arith.constant 2047 : i32
    %95 = arith.minsi %94, %c2047_i32_60 : i32
    %c10_i32_61 = arith.constant 10 : i32
    %c0_i32_62 = arith.constant 0 : i32
    %96 = tpu.memref_slice %arg2[%95, %c0_i32_62] : memref<2048x768xf32, #tpu.memory_space<any>> -> memref<1x768xf32, #tpu.memory_space<any>>
    %c10_i32_63 = arith.constant 10 : i32
    %c0_i32_64 = arith.constant 0 : i32
    %97 = tpu.memref_slice %arg3[%c10_i32_63, %c0_i32_64] : memref<384x768xf32, #tpu.memory_space<vmem>> -> memref<1x768xf32, #tpu.memory_space<vmem>>
    %98 = tpu.memref_slice %arg4[%c10_i32_61] : memref<32x!tpu.dma_semaphore, #tpu.memory_space<semaphore_mem>> -> memref<1x!tpu.dma_semaphore, #tpu.memory_space<semaphore_mem>>
    %99 = tpu.memref_squeeze %98 : memref<1x!tpu.dma_semaphore, #tpu.memory_space<semaphore_mem>> -> memref<!tpu.dma_semaphore, #tpu.memory_space<semaphore_mem>>
    tpu.enqueue_dma source(%96 : memref<1x768xf32, #tpu.memory_space<any>>) target(%97 : memref<1x768xf32, #tpu.memory_space<vmem>>) target_semaphore(%99 : memref<!tpu.dma_semaphore, #tpu.memory_space<semaphore_mem>>)
    %c11_i32 = arith.constant 11 : i32
    %100 = arith.addi %0, %c11_i32 : i32
    %101 = arith.index_cast %100 : i32 to index
    %102 = memref.load %arg1[%101] : memref<384xi32, #tpu.memory_space<smem>>
    %c0_i32_65 = arith.constant 0 : i32
    %103 = arith.maxsi %102, %c0_i32_65 : i32
    %c2047_i32_66 = arith.constant 2047 : i32
    %104 = arith.minsi %103, %c2047_i32_66 : i32
    %c11_i32_67 = arith.constant 11 : i32
    %c0_i32_68 = arith.constant 0 : i32
    %105 = tpu.memref_slice %arg2[%104, %c0_i32_68] : memref<2048x768xf32, #tpu.memory_space<any>> -> memref<1x768xf32, #tpu.memory_space<any>>
    %c11_i32_69 = arith.constant 11 : i32
    %c0_i32_70 = arith.constant 0 : i32
    %106 = tpu.memref_slice %arg3[%c11_i32_69, %c0_i32_70] : memref<384x768xf32, #tpu.memory_space<vmem>> -> memref<1x768xf32, #tpu.memory_space<vmem>>
    %107 = tpu.memref_slice %arg4[%c11_i32_67] : memref<32x!tpu.dma_semaphore, #tpu.memory_space<semaphore_mem>> -> memref<1x!tpu.dma_semaphore, #tpu.memory_space<semaphore_mem>>
    %108 = tpu.memref_squeeze %107 : memref<1x!tpu.dma_semaphore, #tpu.memory_space<semaphore_mem>> -> memref<!tpu.dma_semaphore, #tpu.memory_space<semaphore_mem>>
    tpu.enqueue_dma source(%105 : memref<1x768xf32, #tpu.memory_space<any>>) target(%106 : memref<1x768xf32, #tpu.memory_space<vmem>>) target_semaphore(%108 : memref<!tpu.dma_semaphore, #tpu.memory_space<semaphore_mem>>)
    %c12_i32 = arith.constant 12 : i32
    %109 = arith.addi %0, %c12_i32 : i32
    %110 = arith.index_cast %109 : i32 to index
    %111 = memref.load %arg1[%110] : memref<384xi32, #tpu.memory_space<smem>>
    %c0_i32_71 = arith.constant 0 : i32
    %112 = arith.maxsi %111, %c0_i32_71 : i32
    %c2047_i32_72 = arith.constant 2047 : i32
    %113 = arith.minsi %112, %c2047_i32_72 : i32
    %c12_i32_73 = arith.constant 12 : i32
    %c0_i32_74 = arith.constant 0 : i32
    %114 = tpu.memref_slice %arg2[%113, %c0_i32_74] : memref<2048x768xf32, #tpu.memory_space<any>> -> memref<1x768xf32, #tpu.memory_space<any>>
    %c12_i32_75 = arith.constant 12 : i32
    %c0_i32_76 = arith.constant 0 : i32
    %115 = tpu.memref_slice %arg3[%c12_i32_75, %c0_i32_76] : memref<384x768xf32, #tpu.memory_space<vmem>> -> memref<1x768xf32, #tpu.memory_space<vmem>>
    %116 = tpu.memref_slice %arg4[%c12_i32_73] : memref<32x!tpu.dma_semaphore, #tpu.memory_space<semaphore_mem>> -> memref<1x!tpu.dma_semaphore, #tpu.memory_space<semaphore_mem>>
    %117 = tpu.memref_squeeze %116 : memref<1x!tpu.dma_semaphore, #tpu.memory_space<semaphore_mem>> -> memref<!tpu.dma_semaphore, #tpu.memory_space<semaphore_mem>>
    tpu.enqueue_dma source(%114 : memref<1x768xf32, #tpu.memory_space<any>>) target(%115 : memref<1x768xf32, #tpu.memory_space<vmem>>) target_semaphore(%117 : memref<!tpu.dma_semaphore, #tpu.memory_space<semaphore_mem>>)
    %c13_i32 = arith.constant 13 : i32
    %118 = arith.addi %0, %c13_i32 : i32
    %119 = arith.index_cast %118 : i32 to index
    %120 = memref.load %arg1[%119] : memref<384xi32, #tpu.memory_space<smem>>
    %c0_i32_77 = arith.constant 0 : i32
    %121 = arith.maxsi %120, %c0_i32_77 : i32
    %c2047_i32_78 = arith.constant 2047 : i32
    %122 = arith.minsi %121, %c2047_i32_78 : i32
    %c13_i32_79 = arith.constant 13 : i32
    %c0_i32_80 = arith.constant 0 : i32
    %123 = tpu.memref_slice %arg2[%122, %c0_i32_80] : memref<2048x768xf32, #tpu.memory_space<any>> -> memref<1x768xf32, #tpu.memory_space<any>>
    %c13_i32_81 = arith.constant 13 : i32
    %c0_i32_82 = arith.constant 0 : i32
    %124 = tpu.memref_slice %arg3[%c13_i32_81, %c0_i32_82] : memref<384x768xf32, #tpu.memory_space<vmem>> -> memref<1x768xf32, #tpu.memory_space<vmem>>
    %125 = tpu.memref_slice %arg4[%c13_i32_79] : memref<32x!tpu.dma_semaphore, #tpu.memory_space<semaphore_mem>> -> memref<1x!tpu.dma_semaphore, #tpu.memory_space<semaphore_mem>>
    %126 = tpu.memref_squeeze %125 : memref<1x!tpu.dma_semaphore, #tpu.memory_space<semaphore_mem>> -> memref<!tpu.dma_semaphore, #tpu.memory_space<semaphore_mem>>
    tpu.enqueue_dma source(%123 : memref<1x768xf32, #tpu.memory_space<any>>) target(%124 : memref<1x768xf32, #tpu.memory_space<vmem>>) target_semaphore(%126 : memref<!tpu.dma_semaphore, #tpu.memory_space<semaphore_mem>>)
    %c14_i32 = arith.constant 14 : i32
    %127 = arith.addi %0, %c14_i32 : i32
    %128 = arith.index_cast %127 : i32 to index
    %129 = memref.load %arg1[%128] : memref<384xi32, #tpu.memory_space<smem>>
    %c0_i32_83 = arith.constant 0 : i32
    %130 = arith.maxsi %129, %c0_i32_83 : i32
    %c2047_i32_84 = arith.constant 2047 : i32
    %131 = arith.minsi %130, %c2047_i32_84 : i32
    %c14_i32_85 = arith.constant 14 : i32
    %c0_i32_86 = arith.constant 0 : i32
    %132 = tpu.memref_slice %arg2[%131, %c0_i32_86] : memref<2048x768xf32, #tpu.memory_space<any>> -> memref<1x768xf32, #tpu.memory_space<any>>
    %c14_i32_87 = arith.constant 14 : i32
    %c0_i32_88 = arith.constant 0 : i32
    %133 = tpu.memref_slice %arg3[%c14_i32_87, %c0_i32_88] : memref<384x768xf32, #tpu.memory_space<vmem>> -> memref<1x768xf32, #tpu.memory_space<vmem>>
    %134 = tpu.memref_slice %arg4[%c14_i32_85] : memref<32x!tpu.dma_semaphore, #tpu.memory_space<semaphore_mem>> -> memref<1x!tpu.dma_semaphore, #tpu.memory_space<semaphore_mem>>
    %135 = tpu.memref_squeeze %134 : memref<1x!tpu.dma_semaphore, #tpu.memory_space<semaphore_mem>> -> memref<!tpu.dma_semaphore, #tpu.memory_space<semaphore_mem>>
    tpu.enqueue_dma source(%132 : memref<1x768xf32, #tpu.memory_space<any>>) target(%133 : memref<1x768xf32, #tpu.memory_space<vmem>>) target_semaphore(%135 : memref<!tpu.dma_semaphore, #tpu.memory_space<semaphore_mem>>)
    %c15_i32 = arith.constant 15 : i32
    %136 = arith.addi %0, %c15_i32 : i32
    %137 = arith.index_cast %136 : i32 to index
    %138 = memref.load %arg1[%137] : memref<384xi32, #tpu.memory_space<smem>>
    %c0_i32_89 = arith.constant 0 : i32
    %139 = arith.maxsi %138, %c0_i32_89 : i32
    %c2047_i32_90 = arith.constant 2047 : i32
    %140 = arith.minsi %139, %c2047_i32_90 : i32
    %c15_i32_91 = arith.constant 15 : i32
    %c0_i32_92 = arith.constant 0 : i32
    %141 = tpu.memref_slice %arg2[%140, %c0_i32_92] : memref<2048x768xf32, #tpu.memory_space<any>> -> memref<1x768xf32, #tpu.memory_space<any>>
    %c15_i32_93 = arith.constant 15 : i32
    %c0_i32_94 = arith.constant 0 : i32
    %142 = tpu.memref_slice %arg3[%c15_i32_93, %c0_i32_94] : memref<384x768xf32, #tpu.memory_space<vmem>> -> memref<1x768xf32, #tpu.memory_space<vmem>>
    %143 = tpu.memref_slice %arg4[%c15_i32_91] : memref<32x!tpu.dma_semaphore, #tpu.memory_space<semaphore_mem>> -> memref<1x!tpu.dma_semaphore, #tpu.memory_space<semaphore_mem>>
    %144 = tpu.memref_squeeze %143 : memref<1x!tpu.dma_semaphore, #tpu.memory_space<semaphore_mem>> -> memref<!tpu.dma_semaphore, #tpu.memory_space<semaphore_mem>>
    tpu.enqueue_dma source(%141 : memref<1x768xf32, #tpu.memory_space<any>>) target(%142 : memref<1x768xf32, #tpu.memory_space<vmem>>) target_semaphore(%144 : memref<!tpu.dma_semaphore, #tpu.memory_space<semaphore_mem>>)
    %c16_i32 = arith.constant 16 : i32
    %145 = arith.addi %0, %c16_i32 : i32
    %146 = arith.index_cast %145 : i32 to index
    %147 = memref.load %arg1[%146] : memref<384xi32, #tpu.memory_space<smem>>
    %c0_i32_95 = arith.constant 0 : i32
    %148 = arith.maxsi %147, %c0_i32_95 : i32
    %c2047_i32_96 = arith.constant 2047 : i32
    %149 = arith.minsi %148, %c2047_i32_96 : i32
    %c16_i32_97 = arith.constant 16 : i32
    %c0_i32_98 = arith.constant 0 : i32
    %150 = tpu.memref_slice %arg2[%149, %c0_i32_98] : memref<2048x768xf32, #tpu.memory_space<any>> -> memref<1x768xf32, #tpu.memory_space<any>>
    %c16_i32_99 = arith.constant 16 : i32
    %c0_i32_100 = arith.constant 0 : i32
    %151 = tpu.memref_slice %arg3[%c16_i32_99, %c0_i32_100] : memref<384x768xf32, #tpu.memory_space<vmem>> -> memref<1x768xf32, #tpu.memory_space<vmem>>
    %152 = tpu.memref_slice %arg4[%c16_i32_97] : memref<32x!tpu.dma_semaphore, #tpu.memory_space<semaphore_mem>> -> memref<1x!tpu.dma_semaphore, #tpu.memory_space<semaphore_mem>>
    %153 = tpu.memref_squeeze %152 : memref<1x!tpu.dma_semaphore, #tpu.memory_space<semaphore_mem>> -> memref<!tpu.dma_semaphore, #tpu.memory_space<semaphore_mem>>
    tpu.enqueue_dma source(%150 : memref<1x768xf32, #tpu.memory_space<any>>) target(%151 : memref<1x768xf32, #tpu.memory_space<vmem>>) target_semaphore(%153 : memref<!tpu.dma_semaphore, #tpu.memory_space<semaphore_mem>>)
    %c17_i32 = arith.constant 17 : i32
    %154 = arith.addi %0, %c17_i32 : i32
    %155 = arith.index_cast %154 : i32 to index
    %156 = memref.load %arg1[%155] : memref<384xi32, #tpu.memory_space<smem>>
    %c0_i32_101 = arith.constant 0 : i32
    %157 = arith.maxsi %156, %c0_i32_101 : i32
    %c2047_i32_102 = arith.constant 2047 : i32
    %158 = arith.minsi %157, %c2047_i32_102 : i32
    %c17_i32_103 = arith.constant 17 : i32
    %c0_i32_104 = arith.constant 0 : i32
    %159 = tpu.memref_slice %arg2[%158, %c0_i32_104] : memref<2048x768xf32, #tpu.memory_space<any>> -> memref<1x768xf32, #tpu.memory_space<any>>
    %c17_i32_105 = arith.constant 17 : i32
    %c0_i32_106 = arith.constant 0 : i32
    %160 = tpu.memref_slice %arg3[%c17_i32_105, %c0_i32_106] : memref<384x768xf32, #tpu.memory_space<vmem>> -> memref<1x768xf32, #tpu.memory_space<vmem>>
    %161 = tpu.memref_slice %arg4[%c17_i32_103] : memref<32x!tpu.dma_semaphore, #tpu.memory_space<semaphore_mem>> -> memref<1x!tpu.dma_semaphore, #tpu.memory_space<semaphore_mem>>
    %162 = tpu.memref_squeeze %161 : memref<1x!tpu.dma_semaphore, #tpu.memory_space<semaphore_mem>> -> memref<!tpu.dma_semaphore, #tpu.memory_space<semaphore_mem>>
    tpu.enqueue_dma source(%159 : memref<1x768xf32, #tpu.memory_space<any>>) target(%160 : memref<1x768xf32, #tpu.memory_space<vmem>>) target_semaphore(%162 : memref<!tpu.dma_semaphore, #tpu.memory_space<semaphore_mem>>)
    %c18_i32 = arith.constant 18 : i32
    %163 = arith.addi %0, %c18_i32 : i32
    %164 = arith.index_cast %163 : i32 to index
    %165 = memref.load %arg1[%164] : memref<384xi32, #tpu.memory_space<smem>>
    %c0_i32_107 = arith.constant 0 : i32
    %166 = arith.maxsi %165, %c0_i32_107 : i32
    %c2047_i32_108 = arith.constant 2047 : i32
    %167 = arith.minsi %166, %c2047_i32_108 : i32
    %c18_i32_109 = arith.constant 18 : i32
    %c0_i32_110 = arith.constant 0 : i32
    %168 = tpu.memref_slice %arg2[%167, %c0_i32_110] : memref<2048x768xf32, #tpu.memory_space<any>> -> memref<1x768xf32, #tpu.memory_space<any>>
    %c18_i32_111 = arith.constant 18 : i32
    %c0_i32_112 = arith.constant 0 : i32
    %169 = tpu.memref_slice %arg3[%c18_i32_111, %c0_i32_112] : memref<384x768xf32, #tpu.memory_space<vmem>> -> memref<1x768xf32, #tpu.memory_space<vmem>>
    %170 = tpu.memref_slice %arg4[%c18_i32_109] : memref<32x!tpu.dma_semaphore, #tpu.memory_space<semaphore_mem>> -> memref<1x!tpu.dma_semaphore, #tpu.memory_space<semaphore_mem>>
    %171 = tpu.memref_squeeze %170 : memref<1x!tpu.dma_semaphore, #tpu.memory_space<semaphore_mem>> -> memref<!tpu.dma_semaphore, #tpu.memory_space<semaphore_mem>>
    tpu.enqueue_dma source(%168 : memref<1x768xf32, #tpu.memory_space<any>>) target(%169 : memref<1x768xf32, #tpu.memory_space<vmem>>) target_semaphore(%171 : memref<!tpu.dma_semaphore, #tpu.memory_space<semaphore_mem>>)
    %c19_i32 = arith.constant 19 : i32
    %172 = arith.addi %0, %c19_i32 : i32
    %173 = arith.index_cast %172 : i32 to index
    %174 = memref.load %arg1[%173] : memref<384xi32, #tpu.memory_space<smem>>
    %c0_i32_113 = arith.constant 0 : i32
    %175 = arith.maxsi %174, %c0_i32_113 : i32
    %c2047_i32_114 = arith.constant 2047 : i32
    %176 = arith.minsi %175, %c2047_i32_114 : i32
    %c19_i32_115 = arith.constant 19 : i32
    %c0_i32_116 = arith.constant 0 : i32
    %177 = tpu.memref_slice %arg2[%176, %c0_i32_116] : memref<2048x768xf32, #tpu.memory_space<any>> -> memref<1x768xf32, #tpu.memory_space<any>>
    %c19_i32_117 = arith.constant 19 : i32
    %c0_i32_118 = arith.constant 0 : i32
    %178 = tpu.memref_slice %arg3[%c19_i32_117, %c0_i32_118] : memref<384x768xf32, #tpu.memory_space<vmem>> -> memref<1x768xf32, #tpu.memory_space<vmem>>
    %179 = tpu.memref_slice %arg4[%c19_i32_115] : memref<32x!tpu.dma_semaphore, #tpu.memory_space<semaphore_mem>> -> memref<1x!tpu.dma_semaphore, #tpu.memory_space<semaphore_mem>>
    %180 = tpu.memref_squeeze %179 : memref<1x!tpu.dma_semaphore, #tpu.memory_space<semaphore_mem>> -> memref<!tpu.dma_semaphore, #tpu.memory_space<semaphore_mem>>
    tpu.enqueue_dma source(%177 : memref<1x768xf32, #tpu.memory_space<any>>) target(%178 : memref<1x768xf32, #tpu.memory_space<vmem>>) target_semaphore(%180 : memref<!tpu.dma_semaphore, #tpu.memory_space<semaphore_mem>>)
    %c20_i32 = arith.constant 20 : i32
    %181 = arith.addi %0, %c20_i32 : i32
    %182 = arith.index_cast %181 : i32 to index
    %183 = memref.load %arg1[%182] : memref<384xi32, #tpu.memory_space<smem>>
    %c0_i32_119 = arith.constant 0 : i32
    %184 = arith.maxsi %183, %c0_i32_119 : i32
    %c2047_i32_120 = arith.constant 2047 : i32
    %185 = arith.minsi %184, %c2047_i32_120 : i32
    %c20_i32_121 = arith.constant 20 : i32
    %c0_i32_122 = arith.constant 0 : i32
    %186 = tpu.memref_slice %arg2[%185, %c0_i32_122] : memref<2048x768xf32, #tpu.memory_space<any>> -> memref<1x768xf32, #tpu.memory_space<any>>
    %c20_i32_123 = arith.constant 20 : i32
    %c0_i32_124 = arith.constant 0 : i32
    %187 = tpu.memref_slice %arg3[%c20_i32_123, %c0_i32_124] : memref<384x768xf32, #tpu.memory_space<vmem>> -> memref<1x768xf32, #tpu.memory_space<vmem>>
    %188 = tpu.memref_slice %arg4[%c20_i32_121] : memref<32x!tpu.dma_semaphore, #tpu.memory_space<semaphore_mem>> -> memref<1x!tpu.dma_semaphore, #tpu.memory_space<semaphore_mem>>
    %189 = tpu.memref_squeeze %188 : memref<1x!tpu.dma_semaphore, #tpu.memory_space<semaphore_mem>> -> memref<!tpu.dma_semaphore, #tpu.memory_space<semaphore_mem>>
    tpu.enqueue_dma source(%186 : memref<1x768xf32, #tpu.memory_space<any>>) target(%187 : memref<1x768xf32, #tpu.memory_space<vmem>>) target_semaphore(%189 : memref<!tpu.dma_semaphore, #tpu.memory_space<semaphore_mem>>)
    %c21_i32 = arith.constant 21 : i32
    %190 = arith.addi %0, %c21_i32 : i32
    %191 = arith.index_cast %190 : i32 to index
    %192 = memref.load %arg1[%191] : memref<384xi32, #tpu.memory_space<smem>>
    %c0_i32_125 = arith.constant 0 : i32
    %193 = arith.maxsi %192, %c0_i32_125 : i32
    %c2047_i32_126 = arith.constant 2047 : i32
    %194 = arith.minsi %193, %c2047_i32_126 : i32
    %c21_i32_127 = arith.constant 21 : i32
    %c0_i32_128 = arith.constant 0 : i32
    %195 = tpu.memref_slice %arg2[%194, %c0_i32_128] : memref<2048x768xf32, #tpu.memory_space<any>> -> memref<1x768xf32, #tpu.memory_space<any>>
    %c21_i32_129 = arith.constant 21 : i32
    %c0_i32_130 = arith.constant 0 : i32
    %196 = tpu.memref_slice %arg3[%c21_i32_129, %c0_i32_130] : memref<384x768xf32, #tpu.memory_space<vmem>> -> memref<1x768xf32, #tpu.memory_space<vmem>>
    %197 = tpu.memref_slice %arg4[%c21_i32_127] : memref<32x!tpu.dma_semaphore, #tpu.memory_space<semaphore_mem>> -> memref<1x!tpu.dma_semaphore, #tpu.memory_space<semaphore_mem>>
    %198 = tpu.memref_squeeze %197 : memref<1x!tpu.dma_semaphore, #tpu.memory_space<semaphore_mem>> -> memref<!tpu.dma_semaphore, #tpu.memory_space<semaphore_mem>>
    tpu.enqueue_dma source(%195 : memref<1x768xf32, #tpu.memory_space<any>>) target(%196 : memref<1x768xf32, #tpu.memory_space<vmem>>) target_semaphore(%198 : memref<!tpu.dma_semaphore, #tpu.memory_space<semaphore_mem>>)
    %c22_i32 = arith.constant 22 : i32
    %199 = arith.addi %0, %c22_i32 : i32
    %200 = arith.index_cast %199 : i32 to index
    %201 = memref.load %arg1[%200] : memref<384xi32, #tpu.memory_space<smem>>
    %c0_i32_131 = arith.constant 0 : i32
    %202 = arith.maxsi %201, %c0_i32_131 : i32
    %c2047_i32_132 = arith.constant 2047 : i32
    %203 = arith.minsi %202, %c2047_i32_132 : i32
    %c22_i32_133 = arith.constant 22 : i32
    %c0_i32_134 = arith.constant 0 : i32
    %204 = tpu.memref_slice %arg2[%203, %c0_i32_134] : memref<2048x768xf32, #tpu.memory_space<any>> -> memref<1x768xf32, #tpu.memory_space<any>>
    %c22_i32_135 = arith.constant 22 : i32
    %c0_i32_136 = arith.constant 0 : i32
    %205 = tpu.memref_slice %arg3[%c22_i32_135, %c0_i32_136] : memref<384x768xf32, #tpu.memory_space<vmem>> -> memref<1x768xf32, #tpu.memory_space<vmem>>
    %206 = tpu.memref_slice %arg4[%c22_i32_133] : memref<32x!tpu.dma_semaphore, #tpu.memory_space<semaphore_mem>> -> memref<1x!tpu.dma_semaphore, #tpu.memory_space<semaphore_mem>>
    %207 = tpu.memref_squeeze %206 : memref<1x!tpu.dma_semaphore, #tpu.memory_space<semaphore_mem>> -> memref<!tpu.dma_semaphore, #tpu.memory_space<semaphore_mem>>
    tpu.enqueue_dma source(%204 : memref<1x768xf32, #tpu.memory_space<any>>) target(%205 : memref<1x768xf32, #tpu.memory_space<vmem>>) target_semaphore(%207 : memref<!tpu.dma_semaphore, #tpu.memory_space<semaphore_mem>>)
    %c23_i32 = arith.constant 23 : i32
    %208 = arith.addi %0, %c23_i32 : i32
    %209 = arith.index_cast %208 : i32 to index
    %210 = memref.load %arg1[%209] : memref<384xi32, #tpu.memory_space<smem>>
    %c0_i32_137 = arith.constant 0 : i32
    %211 = arith.maxsi %210, %c0_i32_137 : i32
    %c2047_i32_138 = arith.constant 2047 : i32
    %212 = arith.minsi %211, %c2047_i32_138 : i32
    %c23_i32_139 = arith.constant 23 : i32
    %c0_i32_140 = arith.constant 0 : i32
    %213 = tpu.memref_slice %arg2[%212, %c0_i32_140] : memref<2048x768xf32, #tpu.memory_space<any>> -> memref<1x768xf32, #tpu.memory_space<any>>
    %c23_i32_141 = arith.constant 23 : i32
    %c0_i32_142 = arith.constant 0 : i32
    %214 = tpu.memref_slice %arg3[%c23_i32_141, %c0_i32_142] : memref<384x768xf32, #tpu.memory_space<vmem>> -> memref<1x768xf32, #tpu.memory_space<vmem>>
    %215 = tpu.memref_slice %arg4[%c23_i32_139] : memref<32x!tpu.dma_semaphore, #tpu.memory_space<semaphore_mem>> -> memref<1x!tpu.dma_semaphore, #tpu.memory_space<semaphore_mem>>
    %216 = tpu.memref_squeeze %215 : memref<1x!tpu.dma_semaphore, #tpu.memory_space<semaphore_mem>> -> memref<!tpu.dma_semaphore, #tpu.memory_space<semaphore_mem>>
    tpu.enqueue_dma source(%213 : memref<1x768xf32, #tpu.memory_space<any>>) target(%214 : memref<1x768xf32, #tpu.memory_space<vmem>>) target_semaphore(%216 : memref<!tpu.dma_semaphore, #tpu.memory_space<semaphore_mem>>)
    %c24_i32 = arith.constant 24 : i32
    %217 = arith.addi %0, %c24_i32 : i32
    %218 = arith.index_cast %217 : i32 to index
    %219 = memref.load %arg1[%218] : memref<384xi32, #tpu.memory_space<smem>>
    %c0_i32_143 = arith.constant 0 : i32
    %220 = arith.maxsi %219, %c0_i32_143 : i32
    %c2047_i32_144 = arith.constant 2047 : i32
    %221 = arith.minsi %220, %c2047_i32_144 : i32
    %c24_i32_145 = arith.constant 24 : i32
    %c0_i32_146 = arith.constant 0 : i32
    %222 = tpu.memref_slice %arg2[%221, %c0_i32_146] : memref<2048x768xf32, #tpu.memory_space<any>> -> memref<1x768xf32, #tpu.memory_space<any>>
    %c24_i32_147 = arith.constant 24 : i32
    %c0_i32_148 = arith.constant 0 : i32
    %223 = tpu.memref_slice %arg3[%c24_i32_147, %c0_i32_148] : memref<384x768xf32, #tpu.memory_space<vmem>> -> memref<1x768xf32, #tpu.memory_space<vmem>>
    %224 = tpu.memref_slice %arg4[%c24_i32_145] : memref<32x!tpu.dma_semaphore, #tpu.memory_space<semaphore_mem>> -> memref<1x!tpu.dma_semaphore, #tpu.memory_space<semaphore_mem>>
    %225 = tpu.memref_squeeze %224 : memref<1x!tpu.dma_semaphore, #tpu.memory_space<semaphore_mem>> -> memref<!tpu.dma_semaphore, #tpu.memory_space<semaphore_mem>>
    tpu.enqueue_dma source(%222 : memref<1x768xf32, #tpu.memory_space<any>>) target(%223 : memref<1x768xf32, #tpu.memory_space<vmem>>) target_semaphore(%225 : memref<!tpu.dma_semaphore, #tpu.memory_space<semaphore_mem>>)
    %c25_i32 = arith.constant 25 : i32
    %226 = arith.addi %0, %c25_i32 : i32
    %227 = arith.index_cast %226 : i32 to index
    %228 = memref.load %arg1[%227] : memref<384xi32, #tpu.memory_space<smem>>
    %c0_i32_149 = arith.constant 0 : i32
    %229 = arith.maxsi %228, %c0_i32_149 : i32
    %c2047_i32_150 = arith.constant 2047 : i32
    %230 = arith.minsi %229, %c2047_i32_150 : i32
    %c25_i32_151 = arith.constant 25 : i32
    %c0_i32_152 = arith.constant 0 : i32
    %231 = tpu.memref_slice %arg2[%230, %c0_i32_152] : memref<2048x768xf32, #tpu.memory_space<any>> -> memref<1x768xf32, #tpu.memory_space<any>>
    %c25_i32_153 = arith.constant 25 : i32
    %c0_i32_154 = arith.constant 0 : i32
    %232 = tpu.memref_slice %arg3[%c25_i32_153, %c0_i32_154] : memref<384x768xf32, #tpu.memory_space<vmem>> -> memref<1x768xf32, #tpu.memory_space<vmem>>
    %233 = tpu.memref_slice %arg4[%c25_i32_151] : memref<32x!tpu.dma_semaphore, #tpu.memory_space<semaphore_mem>> -> memref<1x!tpu.dma_semaphore, #tpu.memory_space<semaphore_mem>>
    %234 = tpu.memref_squeeze %233 : memref<1x!tpu.dma_semaphore, #tpu.memory_space<semaphore_mem>> -> memref<!tpu.dma_semaphore, #tpu.memory_space<semaphore_mem>>
    tpu.enqueue_dma source(%231 : memref<1x768xf32, #tpu.memory_space<any>>) target(%232 : memref<1x768xf32, #tpu.memory_space<vmem>>) target_semaphore(%234 : memref<!tpu.dma_semaphore, #tpu.memory_space<semaphore_mem>>)
    %c26_i32 = arith.constant 26 : i32
    %235 = arith.addi %0, %c26_i32 : i32
    %236 = arith.index_cast %235 : i32 to index
    %237 = memref.load %arg1[%236] : memref<384xi32, #tpu.memory_space<smem>>
    %c0_i32_155 = arith.constant 0 : i32
    %238 = arith.maxsi %237, %c0_i32_155 : i32
    %c2047_i32_156 = arith.constant 2047 : i32
    %239 = arith.minsi %238, %c2047_i32_156 : i32
    %c26_i32_157 = arith.constant 26 : i32
    %c0_i32_158 = arith.constant 0 : i32
    %240 = tpu.memref_slice %arg2[%239, %c0_i32_158] : memref<2048x768xf32, #tpu.memory_space<any>> -> memref<1x768xf32, #tpu.memory_space<any>>
    %c26_i32_159 = arith.constant 26 : i32
    %c0_i32_160 = arith.constant 0 : i32
    %241 = tpu.memref_slice %arg3[%c26_i32_159, %c0_i32_160] : memref<384x768xf32, #tpu.memory_space<vmem>> -> memref<1x768xf32, #tpu.memory_space<vmem>>
    %242 = tpu.memref_slice %arg4[%c26_i32_157] : memref<32x!tpu.dma_semaphore, #tpu.memory_space<semaphore_mem>> -> memref<1x!tpu.dma_semaphore, #tpu.memory_space<semaphore_mem>>
    %243 = tpu.memref_squeeze %242 : memref<1x!tpu.dma_semaphore, #tpu.memory_space<semaphore_mem>> -> memref<!tpu.dma_semaphore, #tpu.memory_space<semaphore_mem>>
    tpu.enqueue_dma source(%240 : memref<1x768xf32, #tpu.memory_space<any>>) target(%241 : memref<1x768xf32, #tpu.memory_space<vmem>>) target_semaphore(%243 : memref<!tpu.dma_semaphore, #tpu.memory_space<semaphore_mem>>)
    %c27_i32 = arith.constant 27 : i32
    %244 = arith.addi %0, %c27_i32 : i32
    %245 = arith.index_cast %244 : i32 to index
    %246 = memref.load %arg1[%245] : memref<384xi32, #tpu.memory_space<smem>>
    %c0_i32_161 = arith.constant 0 : i32
    %247 = arith.maxsi %246, %c0_i32_161 : i32
    %c2047_i32_162 = arith.constant 2047 : i32
    %248 = arith.minsi %247, %c2047_i32_162 : i32
    %c27_i32_163 = arith.constant 27 : i32
    %c0_i32_164 = arith.constant 0 : i32
    %249 = tpu.memref_slice %arg2[%248, %c0_i32_164] : memref<2048x768xf32, #tpu.memory_space<any>> -> memref<1x768xf32, #tpu.memory_space<any>>
    %c27_i32_165 = arith.constant 27 : i32
    %c0_i32_166 = arith.constant 0 : i32
    %250 = tpu.memref_slice %arg3[%c27_i32_165, %c0_i32_166] : memref<384x768xf32, #tpu.memory_space<vmem>> -> memref<1x768xf32, #tpu.memory_space<vmem>>
    %251 = tpu.memref_slice %arg4[%c27_i32_163] : memref<32x!tpu.dma_semaphore, #tpu.memory_space<semaphore_mem>> -> memref<1x!tpu.dma_semaphore, #tpu.memory_space<semaphore_mem>>
    %252 = tpu.memref_squeeze %251 : memref<1x!tpu.dma_semaphore, #tpu.memory_space<semaphore_mem>> -> memref<!tpu.dma_semaphore, #tpu.memory_space<semaphore_mem>>
    tpu.enqueue_dma source(%249 : memref<1x768xf32, #tpu.memory_space<any>>) target(%250 : memref<1x768xf32, #tpu.memory_space<vmem>>) target_semaphore(%252 : memref<!tpu.dma_semaphore, #tpu.memory_space<semaphore_mem>>)
    %c28_i32 = arith.constant 28 : i32
    %253 = arith.addi %0, %c28_i32 : i32
    %254 = arith.index_cast %253 : i32 to index
    %255 = memref.load %arg1[%254] : memref<384xi32, #tpu.memory_space<smem>>
    %c0_i32_167 = arith.constant 0 : i32
    %256 = arith.maxsi %255, %c0_i32_167 : i32
    %c2047_i32_168 = arith.constant 2047 : i32
    %257 = arith.minsi %256, %c2047_i32_168 : i32
    %c28_i32_169 = arith.constant 28 : i32
    %c0_i32_170 = arith.constant 0 : i32
    %258 = tpu.memref_slice %arg2[%257, %c0_i32_170] : memref<2048x768xf32, #tpu.memory_space<any>> -> memref<1x768xf32, #tpu.memory_space<any>>
    %c28_i32_171 = arith.constant 28 : i32
    %c0_i32_172 = arith.constant 0 : i32
    %259 = tpu.memref_slice %arg3[%c28_i32_171, %c0_i32_172] : memref<384x768xf32, #tpu.memory_space<vmem>> -> memref<1x768xf32, #tpu.memory_space<vmem>>
    %260 = tpu.memref_slice %arg4[%c28_i32_169] : memref<32x!tpu.dma_semaphore, #tpu.memory_space<semaphore_mem>> -> memref<1x!tpu.dma_semaphore, #tpu.memory_space<semaphore_mem>>
    %261 = tpu.memref_squeeze %260 : memref<1x!tpu.dma_semaphore, #tpu.memory_space<semaphore_mem>> -> memref<!tpu.dma_semaphore, #tpu.memory_space<semaphore_mem>>
    tpu.enqueue_dma source(%258 : memref<1x768xf32, #tpu.memory_space<any>>) target(%259 : memref<1x768xf32, #tpu.memory_space<vmem>>) target_semaphore(%261 : memref<!tpu.dma_semaphore, #tpu.memory_space<semaphore_mem>>)
    %c29_i32 = arith.constant 29 : i32
    %262 = arith.addi %0, %c29_i32 : i32
    %263 = arith.index_cast %262 : i32 to index
    %264 = memref.load %arg1[%263] : memref<384xi32, #tpu.memory_space<smem>>
    %c0_i32_173 = arith.constant 0 : i32
    %265 = arith.maxsi %264, %c0_i32_173 : i32
    %c2047_i32_174 = arith.constant 2047 : i32
    %266 = arith.minsi %265, %c2047_i32_174 : i32
    %c29_i32_175 = arith.constant 29 : i32
    %c0_i32_176 = arith.constant 0 : i32
    %267 = tpu.memref_slice %arg2[%266, %c0_i32_176] : memref<2048x768xf32, #tpu.memory_space<any>> -> memref<1x768xf32, #tpu.memory_space<any>>
    %c29_i32_177 = arith.constant 29 : i32
    %c0_i32_178 = arith.constant 0 : i32
    %268 = tpu.memref_slice %arg3[%c29_i32_177, %c0_i32_178] : memref<384x768xf32, #tpu.memory_space<vmem>> -> memref<1x768xf32, #tpu.memory_space<vmem>>
    %269 = tpu.memref_slice %arg4[%c29_i32_175] : memref<32x!tpu.dma_semaphore, #tpu.memory_space<semaphore_mem>> -> memref<1x!tpu.dma_semaphore, #tpu.memory_space<semaphore_mem>>
    %270 = tpu.memref_squeeze %269 : memref<1x!tpu.dma_semaphore, #tpu.memory_space<semaphore_mem>> -> memref<!tpu.dma_semaphore, #tpu.memory_space<semaphore_mem>>
    tpu.enqueue_dma source(%267 : memref<1x768xf32, #tpu.memory_space<any>>) target(%268 : memref<1x768xf32, #tpu.memory_space<vmem>>) target_semaphore(%270 : memref<!tpu.dma_semaphore, #tpu.memory_space<semaphore_mem>>)
    %c30_i32 = arith.constant 30 : i32
    %271 = arith.addi %0, %c30_i32 : i32
    %272 = arith.index_cast %271 : i32 to index
    %273 = memref.load %arg1[%272] : memref<384xi32, #tpu.memory_space<smem>>
    %c0_i32_179 = arith.constant 0 : i32
    %274 = arith.maxsi %273, %c0_i32_179 : i32
    %c2047_i32_180 = arith.constant 2047 : i32
    %275 = arith.minsi %274, %c2047_i32_180 : i32
    %c30_i32_181 = arith.constant 30 : i32
    %c0_i32_182 = arith.constant 0 : i32
    %276 = tpu.memref_slice %arg2[%275, %c0_i32_182] : memref<2048x768xf32, #tpu.memory_space<any>> -> memref<1x768xf32, #tpu.memory_space<any>>
    %c30_i32_183 = arith.constant 30 : i32
    %c0_i32_184 = arith.constant 0 : i32
    %277 = tpu.memref_slice %arg3[%c30_i32_183, %c0_i32_184] : memref<384x768xf32, #tpu.memory_space<vmem>> -> memref<1x768xf32, #tpu.memory_space<vmem>>
    %278 = tpu.memref_slice %arg4[%c30_i32_181] : memref<32x!tpu.dma_semaphore, #tpu.memory_space<semaphore_mem>> -> memref<1x!tpu.dma_semaphore, #tpu.memory_space<semaphore_mem>>
    %279 = tpu.memref_squeeze %278 : memref<1x!tpu.dma_semaphore, #tpu.memory_space<semaphore_mem>> -> memref<!tpu.dma_semaphore, #tpu.memory_space<semaphore_mem>>
    tpu.enqueue_dma source(%276 : memref<1x768xf32, #tpu.memory_space<any>>) target(%277 : memref<1x768xf32, #tpu.memory_space<vmem>>) target_semaphore(%279 : memref<!tpu.dma_semaphore, #tpu.memory_space<semaphore_mem>>)
    %c31_i32 = arith.constant 31 : i32
    %280 = arith.addi %0, %c31_i32 : i32
    %281 = arith.index_cast %280 : i32 to index
    %282 = memref.load %arg1[%281] : memref<384xi32, #tpu.memory_space<smem>>
    %c0_i32_185 = arith.constant 0 : i32
    %283 = arith.maxsi %282, %c0_i32_185 : i32
    %c2047_i32_186 = arith.constant 2047 : i32
    %284 = arith.minsi %283, %c2047_i32_186 : i32
    %c31_i32_187 = arith.constant 31 : i32
    %c0_i32_188 = arith.constant 0 : i32
    %285 = tpu.memref_slice %arg2[%284, %c0_i32_188] : memref<2048x768xf32, #tpu.memory_space<any>> -> memref<1x768xf32, #tpu.memory_space<any>>
    %c31_i32_189 = arith.constant 31 : i32
    %c0_i32_190 = arith.constant 0 : i32
    %286 = tpu.memref_slice %arg3[%c31_i32_189, %c0_i32_190] : memref<384x768xf32, #tpu.memory_space<vmem>> -> memref<1x768xf32, #tpu.memory_space<vmem>>
    %287 = tpu.memref_slice %arg4[%c31_i32_187] : memref<32x!tpu.dma_semaphore, #tpu.memory_space<semaphore_mem>> -> memref<1x!tpu.dma_semaphore, #tpu.memory_space<semaphore_mem>>
    %288 = tpu.memref_squeeze %287 : memref<1x!tpu.dma_semaphore, #tpu.memory_space<semaphore_mem>> -> memref<!tpu.dma_semaphore, #tpu.memory_space<semaphore_mem>>
    tpu.enqueue_dma source(%285 : memref<1x768xf32, #tpu.memory_space<any>>) target(%286 : memref<1x768xf32, #tpu.memory_space<vmem>>) target_semaphore(%288 : memref<!tpu.dma_semaphore, #tpu.memory_space<semaphore_mem>>)
    %c0_i32_191 = arith.constant 0 : i32
    %c384_i32_192 = arith.constant 384 : i32
    %289 = arith.addi %c0_i32_191, %c384_i32_192 : i32
    %c1_i32_193 = arith.constant 1 : i32
    scf.for %arg5 = %c0_i32_191 to %289 step %c1_i32_193  : i32 {
      %c1_i32_195 = arith.constant 1 : i32
      %290 = arith.muli %arg5, %c1_i32_195 : i32
      %c0_i32_196 = arith.constant 0 : i32
      %291 = arith.addi %c0_i32_196, %290 : i32
      %c31_i32_197 = arith.constant 31 : i32
      %292 = arith.andi %291, %c31_i32_197 : i32
      %293 = arith.addi %0, %291 : i32
      %294 = arith.index_cast %293 : i32 to index
      %295 = memref.load %arg1[%294] : memref<384xi32, #tpu.memory_space<smem>>
      %c0_i32_198 = arith.constant 0 : i32
      %296 = arith.maxsi %295, %c0_i32_198 : i32
      %c2047_i32_199 = arith.constant 2047 : i32
      %297 = arith.minsi %296, %c2047_i32_199 : i32
      %c32_i32 = arith.constant 32 : i32
      %298 = arith.addi %291, %c32_i32 : i32
      %299 = arith.addi %0, %298 : i32
      %c383_i32 = arith.constant 383 : i32
      %300 = arith.minsi %299, %c383_i32 : i32
      %301 = arith.index_cast %300 : i32 to index
      %302 = memref.load %arg1[%301] : memref<384xi32, #tpu.memory_space<smem>>
      %c0_i32_200 = arith.constant 0 : i32
      %303 = arith.maxsi %302, %c0_i32_200 : i32
      %c2047_i32_201 = arith.constant 2047 : i32
      %304 = arith.minsi %303, %c2047_i32_201 : i32
      %c0_i32_202 = arith.constant 0 : i32
      %305 = tpu.memref_slice %arg2[%297, %c0_i32_202] : memref<2048x768xf32, #tpu.memory_space<any>> -> memref<1x768xf32, #tpu.memory_space<any>>
      %c0_i32_203 = arith.constant 0 : i32
      %306 = tpu.memref_slice %arg3[%291, %c0_i32_203] : memref<384x768xf32, #tpu.memory_space<vmem>> -> memref<1x768xf32, #tpu.memory_space<vmem>>
      %307 = tpu.memref_slice %arg4[%292] : memref<32x!tpu.dma_semaphore, #tpu.memory_space<semaphore_mem>> -> memref<1x!tpu.dma_semaphore, #tpu.memory_space<semaphore_mem>>
      %308 = tpu.memref_squeeze %307 : memref<1x!tpu.dma_semaphore, #tpu.memory_space<semaphore_mem>> -> memref<!tpu.dma_semaphore, #tpu.memory_space<semaphore_mem>>
      tpu.wait_dma2 semaphore(%308 : memref<!tpu.dma_semaphore, #tpu.memory_space<semaphore_mem>>) src(%305 : memref<1x768xf32, #tpu.memory_space<any>>) dst(%306 : memref<1x768xf32, #tpu.memory_space<vmem>>)
      %c384_i32_204 = arith.constant 384 : i32
      %309 = arith.cmpi slt, %298, %c384_i32_204 : i32
      %310 = arith.extui %309 : i1 to i32
      %c0_i32_205 = arith.constant 0 : i32
      %311 = arith.cmpi ne, %310, %c0_i32_205 : i32
      scf.if %311 {
        %c0_i32_206 = arith.constant 0 : i32
        %312 = tpu.memref_slice %arg2[%304, %c0_i32_206] : memref<2048x768xf32, #tpu.memory_space<any>> -> memref<1x768xf32, #tpu.memory_space<any>>
        %c0_i32_207 = arith.constant 0 : i32
        %313 = tpu.memref_slice %arg3[%298, %c0_i32_207] : memref<384x768xf32, #tpu.memory_space<vmem>> -> memref<1x768xf32, #tpu.memory_space<vmem>>
        %314 = tpu.memref_slice %arg4[%292] : memref<32x!tpu.dma_semaphore, #tpu.memory_space<semaphore_mem>> -> memref<1x!tpu.dma_semaphore, #tpu.memory_space<semaphore_mem>>
        %315 = tpu.memref_squeeze %314 : memref<1x!tpu.dma_semaphore, #tpu.memory_space<semaphore_mem>> -> memref<!tpu.dma_semaphore, #tpu.memory_space<semaphore_mem>>
        tpu.enqueue_dma source(%312 : memref<1x768xf32, #tpu.memory_space<any>>) target(%313 : memref<1x768xf32, #tpu.memory_space<vmem>>) target_semaphore(%315 : memref<!tpu.dma_semaphore, #tpu.memory_space<semaphore_mem>>)
      } else {
      }
    }
    %c384_i32_194 = arith.constant 384 : i32
    return
  }
  func.func @transform_1(%arg0: i32, %arg1: memref<384xi32, #tpu.memory_space<smem>>) -> (i32, i32) {
    %c0_i32 = arith.constant 0 : i32
    %c0_i32_0 = arith.constant 0 : i32
    return %arg0, %c0_i32 : i32, i32
  }
}

</mosaic_0001>

<bundles_post_ra>
// kernel: tpu_custom_call.1
= control target key start
LH: loop header
LB: loop body
LE: loop exit
PB: predicated region body
PF: predicated region fallthrough
CT: control target
= control target key end

     0   :  { %s2190_s9 = smov [#allocation4]   ;;  %s3059_s0 = inlined_call_operand.hbm [shape: s32[384], index: 0, kind: input, shape index: {}]   ;;  %s3060_s1 = inlined_call_operand.hbm [shape: f32[2048,768], index: 1, kind: input, shape index: {}]   ;;  %s3061_s2 = inlined_call_operand.hbm [shape: f32[384,768], index: 2, kind: output, shape index: {}]  }
   0x1   :  { %8 = dma.hbm_to_smem %s3059_s0, 48, %s2190_s9, [#allocation3] }
   0x2   :  { %2180 = dma.done.wait [#allocation3], 48 }
   0x3   :  { %2181 = vsyncadd [#allocation3], 4294967248 }
   0x4   :  { %10 = sfence }
   0x5   :  { %11 = vsyncpa [#allocation6], 0  ;;  %s13_s12 = sld [smem:[#allocation4]]  ;;  %s2191_s13 = smov [#allocation5]  }
   0x6   :  { %s25_s14 = sshll.u32 %s2191_s13, 4  ;;  %s1046_s15 = sld [smem:[#allocation4 + $0x1]]  ;;  %s2247_s14 = int_to_ptr.vmem [resolvable:$true] %s25_s14 }
   0x7   :  { %s2192_s16 = smov [#allocation5 + $0x1]   ;;  %s2249_s18 = sld [smem:[#allocation4 + $0x2]] }
   0x8   :  { %s44_s17 = sshll.u32 %s2192_s16, 4  ;;  %s2193_s0 = smov [#allocation5 + $0x2]   ;;  %s2251_s17 = int_to_ptr.vmem [resolvable:$true] %s44_s17 }
   0x9   :  { %s2253_s19 = sshll.u32 %s2193_s0, 4  ;;  %s2255_s20 = sld [smem:[#allocation4 + $0x3]]  ;;  %s2291_s19 = int_to_ptr.vmem [resolvable:$true] %s2253_s19 }
   0xa   :  { %s2269_s6 = scalar_lea.hbm %s3060_s1, 196608 }
   0xb   :  { %p14_p0 = scmp.gt.s32.totalorder %s13_s12, 0  ;;  %p1040_p1 = scmp.lt.s32.totalorder %s13_s12, 2047 }
   0xc   :  { %p31_p2 = scmp.gt.s32.totalorder %s1046_s15, 0  ;;  %p1047_p3 = scmp.lt.s32.totalorder %s1046_s15, 2047 }
   0xd   :  { %s3063_s12 = smov (!%p14_p0, %s13_s12), 0  ;;  %p50_p4 = scmp.gt.s32.totalorder %s2249_s18, 0 }
   0xe   :  { %s3065_s12 = smov (!%p1040_p1, %s3063_s12), 2047  ;;  %s3067_s15 = smov (!%p31_p2, %s1046_s15), 0 }
   0xf   :  { %s18_s21 = sshrl.u32 %s3065_s12, 3  ;;  %s19_s22 = sand.u32 7, %s3065_s12  }
  0x10   :  { %s20_s23 = smul.u32 48, %s18_s21  ;;  %s3069_s15 = smov (!%p1047_p3, %s3067_s15), 2047 }
  0x11   :  { %p1054_p5 = scmp.lt.s32.totalorder %s2249_s18, 2047  ;;  %s35_s26 = sshrl.u32 %s3069_s15, 3 }
  0x12   :  { %s21_s24 = sadd.s32 %s20_s23, %s19_s22  ;;  %s36_s30 = sand.u32 7, %s3069_s15  }
  0x13   :  { %s1045_s25 = sshll.u32 %s21_s24, 4 }
  0x14   :  { %s23_s29 = scalar_lea.hbm %s3060_s1, %s1045_s25 }
  0x15   :  { %s1426_s3 = scalar_lea.hbm %s23_s29, 96  ;;  %p1429_p7 = scmp.lt.s32.totalorder %s23_s29, %s3060_s1 }
  0x16   :  { %p1427_p6 = scmp.ne.s32.totalorder %s23_s29, %s1426_s3  ;;  %p1430_p8 = scmp.lt.s32.totalorder %s2269_s6, %s1426_s3 }
  0x18   :  { %p1431_p9 = por %p1430_p8, %p1429_p7 }
  0x1a   :  { %p1432_p10 = pnand %p1431_p9, %p1427_p6 }
  0x1c   :  { %1435 = shalt.err (!%p1432_p10)  }
  0x1d   :  { %s1436_s9 = scalar_lea.vmem %s2247_s14, 96  ;;  %s2278_s10 = scalar_lea.vmem %s2247_s14, 36864 }
  0x1e   :  { %p1437_p11 = scmp.ne.s32.totalorder %s2247_s14, %s1436_s9  ;;  %p1441_p12 = scmp.lt.s32.totalorder %s2247_s14, %s2247_s14 }
  0x1f   :  { %p1442_p13 = scmp.lt.s32.totalorder %s2278_s10, %s1436_s9 }
  0x21   :  { %p1443_p0 = por %p1442_p13, %p1441_p12 }
  0x23   :  { %p1444_p1 = pnand %p1443_p0, %p1437_p11 }
  0x25   :  { %1447 = shalt.err (!%p1444_p1)  }
  0x26   :  { %s2194_s11 = smov 128   ;;  %s2195_s12 = smov 1  }
  0x27   :  { %28 = dma.hbm_to_vmem [thread:$0]  %s23_s29, 96, %s2247_s14, [#allocation2], %s2194_s11, %s2194_s11, %s2195_s12 }
  0x28   :  { %s37_s13 = smul.u32 48, %s35_s26  ;;  %p69_p2 = scmp.gt.s32.totalorder %s2255_s20, 0 }
  0x29   :  { %s51_s15 = scalar_select %p50_p4, %s2249_s18, 0 }
  0x2a   :  { %s38_s16 = sadd.s32 %s37_s13, %s36_s30  ;;  %p1061_p3 = scmp.lt.s32.totalorder %s2255_s20, 2047 }
  0x2b   :  { %s1052_s0 = sshll.u32 %s38_s16, 4 }
  0x2c   :  { %s40_s23 = scalar_lea.hbm %s3060_s1, %s1052_s0 }
  0x2d   :  { %s1448_s24 = scalar_lea.hbm %s40_s23, 96  ;;  %p1451_p7 = scmp.lt.s32.totalorder %s40_s23, %s3060_s1 }
  0x2e   :  { %p1449_p6 = scmp.ne.s32.totalorder %s40_s23, %s1448_s24  ;;  %p1452_p8 = scmp.lt.s32.totalorder %s2269_s6, %s1448_s24 }
  0x30   :  { %p1453_p9 = por %p1452_p8, %p1451_p7 }
  0x32   :  { %p1454_p10 = pnand %p1453_p9, %p1449_p6 }
  0x34   :  { %1457 = shalt.err (!%p1454_p10)  }
  0x35   :  { %s1458_s26 = scalar_lea.vmem %s2251_s17, 96  ;;  %p1463_p11 = scmp.lt.s32.totalorder %s2251_s17, %s2247_s14 }
  0x36   :  { %p1459_p4 = scmp.ne.s32.totalorder %s2251_s17, %s1458_s26  ;;  %p1464_p13 = scmp.lt.s32.totalorder %s2278_s10, %s1458_s26 }
  0x38   :  { %p1465_p0 = por %p1464_p13, %p1463_p11 }
  0x3a   :  { %p1466_p1 = pnand %p1465_p0, %p1459_p4 }
  0x3c   :  { %1469 = shalt.err (!%p1466_p1)  }
  0x3d   :  { %47 = dma.hbm_to_vmem [thread:$0]  %s40_s23, 96, %s2251_s17, [#allocation2 + $0x1], %s2194_s11, %s2194_s11, %s2195_s12 }
  0x3e   :  { %s3071_s15 = smov (!%p1054_p5, %s51_s15), 2047  ;;  %s2196_s4 = smov [#allocation5 + $0x3]  }
  0x3f   :  { %s70_s28 = scalar_select %p69_p2, %s2255_s20, 0 }
  0x40   :  { %s54_s29 = sshrl.u32 %s3071_s15, 3  ;;  %s55_s30 = sand.u32 7, %s3071_s15  }
  0x41   :  { %s56_s3 = smul.u32 48, %s54_s29  ;;  %s82_s5 = sshll.u32 %s2196_s4, 4  ;;  %s2321_s5 = int_to_ptr.vmem [resolvable:$true] %s82_s5 }
  0x42   :  { %s3073_s28 = smov (!%p1061_p3, %s70_s28), 2047 }
  0x43   :  { %s57_s7 = sadd.s32 %s56_s3, %s55_s30  ;;  %s73_s9 = sshrl.u32 %s3073_s28, 3 }
  0x44   :  { %s1059_s8 = sshll.u32 %s57_s7, 4  ;;  %s74_s18 = sand.u32 7, %s3073_s28  }
  0x45   :  { %s59_s17 = scalar_lea.hbm %s3060_s1, %s1059_s8 }
  0x46   :  { %s1470_s0 = scalar_lea.hbm %s59_s17, 96  ;;  %p1473_p2 = scmp.lt.s32.totalorder %s59_s17, %s3060_s1 }
  0x47   :  { %p1471_p5 = scmp.ne.s32.totalorder %s59_s17, %s1470_s0  ;;  %p1474_p6 = scmp.lt.s32.totalorder %s2269_s6, %s1470_s0 }
  0x49   :  { %p1475_p7 = por %p1474_p6, %p1473_p2 }
  0x4b   :  { %p1476_p8 = pnand %p1475_p7, %p1471_p5 }
  0x4d   :  { %1479 = shalt.err (!%p1476_p8)  }
  0x4e   :  { %s1480_s20 = scalar_lea.vmem %s2291_s19, 96  ;;  %p1485_p9 = scmp.lt.s32.totalorder %s2291_s19, %s2247_s14 }
  0x4f   :  { %p1481_p3 = scmp.ne.s32.totalorder %s2291_s19, %s1480_s20  ;;  %p1486_p10 = scmp.lt.s32.totalorder %s2278_s10, %s1480_s20 }
  0x51   :  { %p1487_p4 = por %p1486_p10, %p1485_p9 }
  0x53   :  { %p1488_p11 = pnand %p1487_p4, %p1481_p3 }
  0x55   :  { %1491 = shalt.err (!%p1488_p11)  }
  0x56   :  { %66 = dma.hbm_to_vmem [thread:$0]  %s59_s17, 96, %s2291_s19, [#allocation2 + $0x2], %s2194_s11, %s2194_s11, %s2195_s12 }
  0x57   :  { %s75_s15 = smul.u32 48, %s73_s9  ;;  %s2339_s23 = sld [smem:[#allocation4 + $0x4]] }
  0x58   :  { %s2341_s24 = sld [smem:[#allocation4 + $0x5]]  ;;  %s2197_s27 = smov [#allocation5 + $0x4]  }
  0x59   :  { %s76_s25 = sadd.s32 %s75_s15, %s74_s18  ;;  %s101_s26 = sshll.u32 %s2197_s27, 4  ;;  %s2343_s26 = int_to_ptr.vmem [resolvable:$true] %s101_s26 }
  0x5a   :  { %s1066_s28 = sshll.u32 %s76_s25, 4 }
  0x5b   :  { %s78_s3 = scalar_lea.hbm %s3060_s1, %s1066_s28 }
  0x5c   :  { %s1492_s4 = scalar_lea.hbm %s78_s3, 96  ;;  %p1495_p0 = scmp.lt.s32.totalorder %s78_s3, %s3060_s1 }
  0x5d   :  { %p1493_p13 = scmp.ne.s32.totalorder %s78_s3, %s1492_s4  ;;  %p1496_p1 = scmp.lt.s32.totalorder %s2269_s6, %s1492_s4 }
  0x5f   :  { %p1497_p5 = por %p1496_p1, %p1495_p0 }
  0x61   :  { %p1498_p2 = pnand %p1497_p5, %p1493_p13 }
  0x63   :  { %1501 = shalt.err (!%p1498_p2)  }
  0x64   :  { %s1502_s19 = scalar_lea.vmem %s2321_s5, 96  ;;  %p1507_p7 = scmp.lt.s32.totalorder %s2321_s5, %s2247_s14 }
  0x65   :  { %p1503_p6 = scmp.ne.s32.totalorder %s2321_s5, %s1502_s19  ;;  %p1508_p8 = scmp.lt.s32.totalorder %s2278_s10, %s1502_s19 }
  0x67   :  { %p1509_p3 = por %p1508_p8, %p1507_p7 }
  0x69   :  { %p1510_p9 = pnand %p1509_p3, %p1503_p6 }
  0x6b   :  { %1513 = shalt.err (!%p1510_p9)  }
  0x6c   :  { %85 = dma.hbm_to_vmem [thread:$0]  %s78_s3, 96, %s2321_s5, [#allocation2 + $0x3], %s2194_s11, %s2194_s11, %s2195_s12 }
  0x6d   :  { %p88_p10 = scmp.gt.s32.totalorder %s2339_s23, 0  ;;  %p1068_p4 = scmp.lt.s32.totalorder %s2339_s23, 2047 }
  0x6e   :  { %p107_p11 = scmp.gt.s32.totalorder %s2341_s24, 0  ;;  %p1075_p13 = scmp.lt.s32.totalorder %s2341_s24, 2047 }
  0x6f   :  { %s3075_s23 = smov (!%p88_p10, %s2339_s23), 0  ;;  %s2198_s22 = smov [#allocation5 + $0x5]  }
  0x70   :  { %s3077_s24 = smov (!%p107_p11, %s2341_s24), 0  ;;  %s3079_s23 = smov (!%p1068_p4, %s3075_s23), 2047 }
  0x71   :  { %s3081_s24 = smov (!%p1075_p13, %s3077_s24), 2047  ;;  %s92_s9 = sshrl.u32 %s3079_s23, 3 }
  0x72   :  { %s93_s13 = sand.u32 7, %s3079_s23   ;;  %s94_s16 = smul.u32 48, %s92_s9 }
  0x73   :  { %s111_s17 = sshrl.u32 %s3081_s24, 3  ;;  %s112_s18 = sand.u32 7, %s3081_s24  }
  0x74   :  { %s113_s0 = smul.u32 48, %s111_s17  ;;  %s95_s21 = sadd.s32 %s94_s16, %s93_s13 }
  0x75   :  { %s120_s20 = sshll.u32 %s2198_s22, 4  ;;  %s1073_s15 = sshll.u32 %s95_s21, 4  ;;  %s121_s20 = int_to_ptr.vmem [resolvable:$true] %s120_s20 }
  0x76   :  { %s114_s5 = sadd.s32 %s113_s0, %s112_s18  ;;  %s97_s28 = scalar_lea.hbm %s3060_s1, %s1073_s15 }
  0x77   :  { %s1080_s29 = sshll.u32 %s114_s5, 4  ;;  %s1514_s30 = scalar_lea.hbm %s97_s28, 96 }
  0x78   :  { %p1515_p0 = scmp.ne.s32.totalorder %s97_s28, %s1514_s30  ;;  %p1517_p1 = scmp.lt.s32.totalorder %s97_s28, %s3060_s1 }
  0x79   :  { %p1518_p5 = scmp.lt.s32.totalorder %s2269_s6, %s1514_s30 }
  0x7b   :  { %p1519_p2 = por %p1518_p5, %p1517_p1 }
  0x7d   :  { %p1520_p6 = pnand %p1519_p2, %p1515_p0 }
  0x7f   :  { %1523 = shalt.err (!%p1520_p6)  }
  0x80   :  { %s1524_s23 = scalar_lea.vmem %s2343_s26, 96  ;;  %p1529_p8 = scmp.lt.s32.totalorder %s2343_s26, %s2247_s14 }
  0x81   :  { %p1525_p7 = scmp.ne.s32.totalorder %s2343_s26, %s1524_s23  ;;  %p1530_p3 = scmp.lt.s32.totalorder %s2278_s10, %s1524_s23 }
  0x83   :  { %p1531_p9 = por %p1530_p3, %p1529_p8 }
  0x85   :  { %p1532_p10 = pnand %p1531_p9, %p1525_p7 }
  0x87   :  { %1535 = shalt.err (!%p1532_p10)  }
  0x88   :  { %104 = dma.hbm_to_vmem [thread:$0]  %s97_s28, 96, %s2343_s26, [#allocation2 + $0x4], %s2194_s11, %s2194_s11, %s2195_s12 }
  0x89   :  { %s116_s8 = scalar_lea.hbm %s3060_s1, %s1080_s29 }
  0x8a   :  { %s1536_s19 = scalar_lea.hbm %s116_s8, 96  ;;  %p1539_p11 = scmp.lt.s32.totalorder %s116_s8, %s3060_s1 }
  0x8b   :  { %p1537_p4 = scmp.ne.s32.totalorder %s116_s8, %s1536_s19  ;;  %p1540_p13 = scmp.lt.s32.totalorder %s2269_s6, %s1536_s19 }
  0x8d   :  { %p1541_p0 = por %p1540_p13, %p1539_p11 }
  0x8f   :  { %p1542_p1 = pnand %p1541_p0, %p1537_p4 }
  0x91   :  { %1545 = shalt.err (!%p1542_p1)  }
  0x92   :  { %s1546_s16 = scalar_lea.vmem %s121_s20, 96  ;;  %p1551_p2 = scmp.lt.s32.totalorder %s121_s20, %s2247_s14 }
  0x93   :  { %p1547_p5 = scmp.ne.s32.totalorder %s121_s20, %s1546_s16  ;;  %p1552_p6 = scmp.lt.s32.totalorder %s2278_s10, %s1546_s16 }
  0x95   :  { %p1553_p7 = por %p1552_p6, %p1551_p2 }
  0x97   :  { %p1554_p8 = pnand %p1553_p7, %p1547_p5 }
  0x99   :  { %1557 = shalt.err (!%p1554_p8)  }
  0x9a   :  { %123 = dma.hbm_to_vmem [thread:$0]  %s116_s8, 96, %s121_s20, [#allocation2 + $0x5], %s2194_s11, %s2194_s11, %s2195_s12 }
  0x9b   :  { %s1081_s26 = sld [smem:[#allocation4 + $0x6]]  ;;  %s2199_s17 = smov [#allocation5 + $0x6]  }
  0x9c   :  { %s139_s18 = sshll.u32 %s2199_s17, 4  ;;  %s1088_s0 = sld [smem:[#allocation4 + $0x7]]  ;;  %s2395_s18 = int_to_ptr.vmem [resolvable:$true] %s139_s18 }
  0x9d   :  { %s2200_s21 = smov [#allocation5 + $0x7]   ;;  %s2397_s15 = sld [smem:[#allocation4 + $0x8]] }
  0x9e   :  { %s158_s22 = sshll.u32 %s2200_s21, 4  ;;  %s2201_s5 = smov [#allocation5 + $0x30]   ;;  %s2399_s22 = int_to_ptr.vmem [resolvable:$true] %s158_s22 }
  0x9f   :  { %s2401_s25 = sshll.u32 %s2201_s5, 4  ;;  %s2403_s27 = sld [smem:[#allocation4 + $0x9]]  ;;  %s2443_s25 = int_to_ptr.vmem [resolvable:$true] %s2401_s25 }
  0xa1   :  { %p126_p3 = scmp.gt.s32.totalorder %s1081_s26, 0  ;;  %p1082_p9 = scmp.lt.s32.totalorder %s1081_s26, 2047 }
  0xa2   :  { %p145_p10 = scmp.gt.s32.totalorder %s1088_s0, 0  ;;  %p1089_p4 = scmp.lt.s32.totalorder %s1088_s0, 2047 }
  0xa3   :  { %s3083_s26 = smov (!%p126_p3, %s1081_s26), 0  ;;  %p164_p11 = scmp.gt.s32.totalorder %s2397_s15, 0 }
  0xa4   :  { %s3085_s0 = smov (!%p145_p10, %s1088_s0), 0  ;;  %s3087_s26 = smov (!%p1082_p9, %s3083_s26), 2047 }
  0xa5   :  { %s3089_s0 = smov (!%p1089_p4, %s3085_s0), 2047  ;;  %s130_s20 = sshrl.u32 %s3087_s26, 3 }
  0xa6   :  { %s131_s28 = sand.u32 7, %s3087_s26   ;;  %s132_s29 = smul.u32 48, %s130_s20 }
  0xa7   :  { %s149_s30 = sshrl.u32 %s3089_s0, 3  ;;  %s150_s3 = sand.u32 7, %s3089_s0  }
  0xa8   :  { %s151_s4 = smul.u32 48, %s149_s30  ;;  %s133_s23 = sadd.s32 %s132_s29, %s131_s28 }
  0xa9   :  { %s1087_s24 = sshll.u32 %s133_s23, 4 }
  0xaa   :  { %s152_s7 = sadd.s32 %s151_s4, %s150_s3  ;;  %s135_s9 = scalar_lea.hbm %s3060_s1, %s1087_s24 }
  0xab   :  { %s1094_s13 = sshll.u32 %s152_s7, 4  ;;  %s1558_s16 = scalar_lea.hbm %s135_s9, 96 }
  0xac   :  { %p1559_p13 = scmp.ne.s32.totalorder %s135_s9, %s1558_s16  ;;  %p1561_p0 = scmp.lt.s32.totalorder %s135_s9, %s3060_s1 }
  0xad   :  { %p1562_p1 = scmp.lt.s32.totalorder %s2269_s6, %s1558_s16 }
  0xaf   :  { %p1563_p5 = por %p1562_p1, %p1561_p0 }
  0xb1   :  { %p1564_p2 = pnand %p1563_p5, %p1559_p13 }
  0xb3   :  { %1567 = shalt.err (!%p1564_p2)  }
  0xb4   :  { %s1568_s26 = scalar_lea.vmem %s2395_s18, 96  ;;  %p1573_p7 = scmp.lt.s32.totalorder %s2395_s18, %s2247_s14 }
  0xb5   :  { %p1569_p6 = scmp.ne.s32.totalorder %s2395_s18, %s1568_s26  ;;  %p1574_p8 = scmp.lt.s32.totalorder %s2278_s10, %s1568_s26 }
  0xb7   :  { %p1575_p3 = por %p1574_p8, %p1573_p7 }
  0xb9   :  { %p1576_p9 = pnand %p1575_p3, %p1569_p6 }
  0xbb   :  { %1579 = shalt.err (!%p1576_p9)  }
  0xbc   :  { %142 = dma.hbm_to_vmem [thread:$0]  %s135_s9, 96, %s2395_s18, [#allocation2 + $0x6], %s2194_s11, %s2194_s11, %s2195_s12 }
  0xbd   :  { %s154_s20 = scalar_lea.hbm %s3060_s1, %s1094_s13  ;;  %p1096_p10 = scmp.lt.s32.totalorder %s2397_s15, 2047 }
  0xbe   :  { %s1580_s28 = scalar_lea.hbm %s154_s20, 96  ;;  %p1583_p13 = scmp.lt.s32.totalorder %s154_s20, %s3060_s1 }
  0xbf   :  { %p1581_p4 = scmp.ne.s32.totalorder %s154_s20, %s1580_s28  ;;  %p1584_p0 = scmp.lt.s32.totalorder %s2269_s6, %s1580_s28 }
  0xc1   :  { %p1585_p1 = por %p1584_p0, %p1583_p13 }
  0xc3   :  { %p1586_p5 = pnand %p1585_p1, %p1581_p4 }
  0xc5   :  { %1589 = shalt.err (!%p1586_p5)  }
  0xc6   :  { %s1590_s18 = scalar_lea.vmem %s2399_s22, 96  ;;  %p1595_p6 = scmp.lt.s32.totalorder %s2399_s22, %s2247_s14 }
  0xc7   :  { %p1591_p2 = scmp.ne.s32.totalorder %s2399_s22, %s1590_s18  ;;  %p1596_p7 = scmp.lt.s32.totalorder %s2278_s10, %s1590_s18 }
  0xc9   :  { %p1597_p8 = por %p1596_p7, %p1595_p6 }
  0xcb   :  { %p1598_p3 = pnand %p1597_p8, %p1591_p2 }
  0xcd   :  { %1601 = shalt.err (!%p1598_p3)  }
  0xce   :  { %161 = dma.hbm_to_vmem [thread:$0]  %s154_s20, 96, %s2399_s22, [#allocation2 + $0x7], %s2194_s11, %s2194_s11, %s2195_s12 }
  0xcf   :  { %s165_s3 = scalar_select %p164_p11, %s2397_s15, 0 }
  0xd0   :  { %p183_p9 = scmp.gt.s32.totalorder %s2403_s27, 0  ;;  %p1103_p4 = scmp.lt.s32.totalorder %s2403_s27, 2047 }
  0xd1   :  { %s3091_s3 = smov (!%p1096_p10, %s165_s3), 2047  ;;  %s2452_s8 = sld [smem:[#allocation4 + $0xa]] }
  0xd2   :  { %s2449_s4 = scalar_select %p183_p9, %s2403_s27, 0 }
  0xd3   :  { %s168_s23 = sshrl.u32 %s3091_s3, 3  ;;  %s169_s24 = sand.u32 7, %s3091_s3  }
  0xd4   :  { %s170_s7 = smul.u32 48, %s168_s23  ;;  %s2202_s9 = smov [#allocation5 + $0x31]  }
  0xd5   :  { %s196_s13 = sshll.u32 %s2202_s9, 4  ;;  %s2454_s13 = int_to_ptr.vmem [resolvable:$true] %s196_s13 }
  0xd6   :  { %s171_s19 = sadd.s32 %s170_s7, %s169_s24 }
  0xd7   :  { %s1101_s22 = sshll.u32 %s171_s19, 4 }
  0xd8   :  { %s173_s15 = scalar_lea.hbm %s3060_s1, %s1101_s22 }
  0xd9   :  { %s1602_s21 = scalar_lea.hbm %s173_s15, 96  ;;  %p1605_p10 = scmp.lt.s32.totalorder %s173_s15, %s3060_s1 }
  0xda   :  { %p1603_p11 = scmp.ne.s32.totalorder %s173_s15, %s1602_s21  ;;  %p1606_p13 = scmp.lt.s32.totalorder %s2269_s6, %s1602_s21 }
  0xdc   :  { %p1607_p0 = por %p1606_p13, %p1605_p10 }
  0xde   :  { %p1608_p1 = pnand %p1607_p0, %p1603_p11 }
  0xe0   :  { %1611 = shalt.err (!%p1608_p1)  }
  0xe1   :  { %s1612_s5 = scalar_lea.vmem %s2443_s25, 96  ;;  %p1617_p2 = scmp.lt.s32.totalorder %s2443_s25, %s2247_s14 }
  0xe2   :  { %p1613_p5 = scmp.ne.s32.totalorder %s2443_s25, %s1612_s5  ;;  %p1618_p6 = scmp.lt.s32.totalorder %s2278_s10, %s1612_s5 }
  0xe4   :  { %p1619_p7 = por %p1618_p6, %p1617_p2 }
  0xe6   :  { %p1620_p8 = pnand %p1619_p7, %p1613_p5 }
  0xe8   :  { %1623 = shalt.err (!%p1620_p8)  }
  0xe9   :  { %180 = dma.hbm_to_vmem [thread:$0]  %s173_s15, 96, %s2443_s25, [#allocation2 + $0x8], %s2194_s11, %s2194_s11, %s2195_s12 }
  0xea   :  { %s3093_s4 = smov (!%p1103_p4, %s2449_s4), 2047  ;;  %p202_p3 = scmp.gt.s32.totalorder %s2452_s8, 0 }
  0xeb   :  { %p1110_p9 = scmp.lt.s32.totalorder %s2452_s8, 2047  ;;  %s187_s20 = sshrl.u32 %s3093_s4, 3 }
  0xec   :  { %s188_s28 = sand.u32 7, %s3093_s4   ;;  %s189_s29 = smul.u32 48, %s187_s20 }
  0xed   :  { %s2203_s30 = smov [#allocation5 + $0x32]   ;;  %s2480_s7 = sld [smem:[#allocation4 + $0xb]] }
  0xee   :  { %s215_s18 = sshll.u32 %s2203_s30, 4  ;;  %s190_s23 = sadd.s32 %s189_s29, %s188_s28  ;;  %s2478_s18 = int_to_ptr.vmem [resolvable:$true] %s215_s18 }
  0xef   :  { %s203_s3 = scalar_select %p202_p3, %s2452_s8, 0 }
  0xf0   :  { %s1108_s24 = sshll.u32 %s190_s23, 4 }
  0xf1   :  { %s192_s25 = scalar_lea.hbm %s3060_s1, %s1108_s24 }
  0xf2   :  { %s1624_s27 = scalar_lea.hbm %s192_s25, 96  ;;  %p1627_p11 = scmp.lt.s32.totalorder %s192_s25, %s3060_s1 }
  0xf3   :  { %p1625_p4 = scmp.ne.s32.totalorder %s192_s25, %s1624_s27  ;;  %p1628_p10 = scmp.lt.s32.totalorder %s2269_s6, %s1624_s27 }
  0xf5   :  { %p1629_p13 = por %p1628_p10, %p1627_p11 }
  0xf7   :  { %p1630_p0 = pnand %p1629_p13, %p1625_p4 }
  0xf9   :  { %1633 = shalt.err (!%p1630_p0)  }
  0xfa   :  { %s1634_s4 = scalar_lea.vmem %s2454_s13, 96  ;;  %p1639_p5 = scmp.lt.s32.totalorder %s2454_s13, %s2247_s14 }
  0xfb   :  { %p1635_p1 = scmp.ne.s32.totalorder %s2454_s13, %s1634_s4  ;;  %p1640_p2 = scmp.lt.s32.totalorder %s2278_s10, %s1634_s4 }
  0xfd   :  { %p1641_p6 = por %p1640_p2, %p1639_p5 }
  0xff   :  { %p1642_p7 = pnand %p1641_p6, %p1635_p1 }
 0x101   :  { %1645 = shalt.err (!%p1642_p7)  }
 0x102   :  { %199 = dma.hbm_to_vmem [thread:$0]  %s192_s25, 96, %s2454_s13, [#allocation2 + $0x9], %s2194_s11, %s2194_s11, %s2195_s12 }
 0x103   :  { %s3095_s3 = smov (!%p1110_p9, %s203_s3), 2047  ;;  %s2204_s17 = smov [#allocation5 + $0x33]  }
 0x104   :  { %s234_s15 = sshll.u32 %s2204_s17, 4  ;;  %s2500_s21 = sld [smem:[#allocation4 + $0xc]]  ;;  %s2504_s15 = int_to_ptr.vmem [resolvable:$true] %s234_s15 }
 0x105   :  { %s206_s26 = sshrl.u32 %s3095_s3, 3  ;;  %s207_s0 = sand.u32 7, %s3095_s3  }
 0x106   :  { %s208_s5 = smul.u32 48, %s206_s26  ;;  %p221_p8 = scmp.gt.s32.totalorder %s2480_s7, 0 }
 0x107   :  { %p1117_p3 = scmp.lt.s32.totalorder %s2480_s7, 2047  ;;  %s2205_s29 = smov [#allocation5 + $0x34]  }
 0x108   :  { %s209_s20 = sadd.s32 %s208_s5, %s207_s0  ;;  %s253_s30 = sshll.u32 %s2205_s29, 4  ;;  %s2532_s30 = int_to_ptr.vmem [resolvable:$true] %s253_s30 }
 0x109   :  { %s1115_s28 = sshll.u32 %s209_s20, 4 }
 0x10a   :  { %s211_s23 = scalar_lea.hbm %s3060_s1, %s1115_s28  ;;  %p240_p9 = scmp.gt.s32.totalorder %s2500_s21, 0 }
 0x10b   :  { %s1646_s24 = scalar_lea.hbm %s211_s23, 96  ;;  %p1649_p11 = scmp.lt.s32.totalorder %s211_s23, %s3060_s1 }
 0x10c   :  { %p1647_p4 = scmp.ne.s32.totalorder %s211_s23, %s1646_s24  ;;  %p1650_p10 = scmp.lt.s32.totalorder %s2269_s6, %s1646_s24 }
 0x10e   :  { %p1651_p13 = por %p1650_p10, %p1649_p11 }
 0x110   :  { %p1652_p0 = pnand %p1651_p13, %p1647_p4 }
 0x112   :  { %1655 = shalt.err (!%p1652_p0)  }
 0x113   :  { %s1656_s3 = scalar_lea.vmem %s2478_s18, 96  ;;  %p1661_p5 = scmp.lt.s32.totalorder %s2478_s18, %s2247_s14 }
 0x114   :  { %p1657_p1 = scmp.ne.s32.totalorder %s2478_s18, %s1656_s3  ;;  %p1662_p2 = scmp.lt.s32.totalorder %s2278_s10, %s1656_s3 }
 0x116   :  { %p1663_p6 = por %p1662_p2, %p1661_p5 }
 0x118   :  { %p1664_p7 = pnand %p1663_p6, %p1657_p1 }
 0x11a   :  { %1667 = shalt.err (!%p1664_p7)  }
 0x11b   :  { %218 = dma.hbm_to_vmem [thread:$0]  %s211_s23, 96, %s2478_s18, [#allocation2 + $0xa], %s2194_s11, %s2194_s11, %s2195_s12 }
 0x11c   :  { %s222_s25 = scalar_select %p221_p8, %s2480_s7, 0 }
 0x11d   :  { %s241_s27 = scalar_select %p240_p9, %s2500_s21, 0 }
 0x11e   :  { %s3097_s25 = smov (!%p1117_p3, %s222_s25), 2047  ;;  %p1124_p4 = scmp.lt.s32.totalorder %s2500_s21, 2047 }
 0x11f   :  { %s225_s22 = sshrl.u32 %s3097_s25, 3  ;;  %s226_s16 = sand.u32 7, %s3097_s25  }
 0x120   :  { %s227_s4 = smul.u32 48, %s225_s22  ;;  %s2534_s17 = sld [smem:[#allocation4 + $0xd]] }
 0x121   :  { %s3099_s27 = smov (!%p1124_p4, %s241_s27), 2047 }
 0x122   :  { %s228_s26 = sadd.s32 %s227_s4, %s226_s16  ;;  %s244_s5 = sshrl.u32 %s3099_s27, 3 }
 0x123   :  { %s1122_s0 = sshll.u32 %s228_s26, 4  ;;  %s245_s29 = sand.u32 7, %s3099_s27  }
 0x124   :  { %s230_s28 = scalar_lea.hbm %s3060_s1, %s1122_s0 }
 0x125   :  { %s1668_s7 = scalar_lea.hbm %s230_s28, 96  ;;  %p1671_p3 = scmp.lt.s32.totalorder %s230_s28, %s3060_s1 }
 0x126   :  { %p1669_p8 = scmp.ne.s32.totalorder %s230_s28, %s1668_s7  ;;  %p1672_p9 = scmp.lt.s32.totalorder %s2269_s6, %s1668_s7 }
 0x128   :  { %p1673_p11 = por %p1672_p9, %p1671_p3 }
 0x12a   :  { %p1674_p10 = pnand %p1673_p11, %p1669_p8 }
 0x12c   :  { %1677 = shalt.err (!%p1674_p10)  }
 0x12d   :  { %s1678_s8 = scalar_lea.vmem %s2504_s15, 96  ;;  %p1683_p0 = scmp.lt.s32.totalorder %s2504_s15, %s2247_s14 }
 0x12e   :  { %p1679_p13 = scmp.ne.s32.totalorder %s2504_s15, %s1678_s8  ;;  %p1684_p1 = scmp.lt.s32.totalorder %s2278_s10, %s1678_s8 }
 0x130   :  { %p1685_p5 = por %p1684_p1, %p1683_p0 }
 0x132   :  { %p1686_p2 = pnand %p1685_p5, %p1679_p13 }
 0x134   :  { %1689 = shalt.err (!%p1686_p2)  }
 0x135   :  { %237 = dma.hbm_to_vmem [thread:$0]  %s230_s28, 96, %s2504_s15, [#allocation2 + $0xb], %s2194_s11, %s2194_s11, %s2195_s12 }
 0x136   :  { %s246_s23 = smul.u32 48, %s244_s5  ;;  %p259_p6 = scmp.gt.s32.totalorder %s2534_s17, 0 }
 0x137   :  { %p1131_p7 = scmp.lt.s32.totalorder %s2534_s17, 2047  ;;  %s2206_s24 = smov [#allocation5 + $0x35]  }
 0x138   :  { %s272_s19 = sshll.u32 %s2206_s24, 4  ;;  %s247_s9 = sadd.s32 %s246_s23, %s245_s29  ;;  %s2554_s19 = int_to_ptr.vmem [resolvable:$true] %s272_s19 }
 0x139   :  { %s1129_s3 = sshll.u32 %s247_s9, 4  ;;  %s2556_s25 = sld [smem:[#allocation4 + $0xe]] }
 0x13a   :  { %s249_s16 = scalar_lea.hbm %s3060_s1, %s1129_s3 }
 0x13b   :  { %s1690_s4 = scalar_lea.hbm %s249_s16, 96  ;;  %p1693_p8 = scmp.lt.s32.totalorder %s249_s16, %s3060_s1 }
 0x13c   :  { %p1691_p4 = scmp.ne.s32.totalorder %s249_s16, %s1690_s4  ;;  %p1694_p3 = scmp.lt.s32.totalorder %s2269_s6, %s1690_s4 }
 0x13e   :  { %p1695_p9 = por %p1694_p3, %p1693_p8 }
 0x140   :  { %p1696_p11 = pnand %p1695_p9, %p1691_p4 }
 0x142   :  { %1699 = shalt.err (!%p1696_p11)  }
 0x143   :  { %s1700_s15 = scalar_lea.vmem %s2532_s30, 96  ;;  %p1705_p13 = scmp.lt.s32.totalorder %s2532_s30, %s2247_s14 }
 0x144   :  { %p1701_p10 = scmp.ne.s32.totalorder %s2532_s30, %s1700_s15  ;;  %p1706_p0 = scmp.lt.s32.totalorder %s2278_s10, %s1700_s15 }
 0x146   :  { %p1707_p1 = por %p1706_p0, %p1705_p13 }
 0x148   :  { %p1708_p5 = pnand %p1707_p1, %p1701_p10 }
 0x14a   :  { %1711 = shalt.err (!%p1708_p5)  }
 0x14b   :  { %256 = dma.hbm_to_vmem [thread:$0]  %s249_s16, 96, %s2532_s30, [#allocation2 + $0xc], %s2194_s11, %s2194_s11, %s2195_s12 }
 0x14c   :  { %s260_s5 = scalar_select %p259_p6, %s2534_s17, 0 }
 0x14d   :  { %s2207_s18 = smov [#allocation5 + $0x36]   ;;  %s2577_s28 = sld [smem:[#allocation4 + $0xf]] }
 0x14e   :  { %s291_s20 = sshll.u32 %s2207_s18, 4  ;;  %s3101_s5 = smov (!%p1131_p7, %s260_s5), 2047  ;;  %s2583_s20 = int_to_ptr.vmem [resolvable:$true] %s291_s20 }
 0x14f   :  { %p278_p2 = scmp.gt.s32.totalorder %s2556_s25, 0  ;;  %p1138_p4 = scmp.lt.s32.totalorder %s2556_s25, 2047 }
 0x150   :  { %s263_s29 = sshrl.u32 %s3101_s5, 3  ;;  %s264_s7 = sand.u32 7, %s3101_s5  }
 0x151   :  { %s265_s13 = smul.u32 48, %s263_s29 }
 0x152   :  { %s279_s21 = scalar_select %p278_p2, %s2556_s25, 0 }
 0x153   :  { %s266_s30 = sadd.s32 %s265_s13, %s264_s7  ;;  %p297_p8 = scmp.gt.s32.totalorder %s2577_s28, 0 }
 0x154   :  { %s1136_s8 = sshll.u32 %s266_s30, 4  ;;  %p1145_p6 = scmp.lt.s32.totalorder %s2577_s28, 2047 }
 0x155   :  { %s268_s17 = scalar_lea.hbm %s3060_s1, %s1136_s8 }
 0x156   :  { %s1712_s9 = scalar_lea.hbm %s268_s17, 96  ;;  %p1715_p7 = scmp.lt.s32.totalorder %s268_s17, %s3060_s1 }
 0x157   :  { %p1713_p3 = scmp.ne.s32.totalorder %s268_s17, %s1712_s9  ;;  %p1716_p9 = scmp.lt.s32.totalorder %s2269_s6, %s1712_s9 }
 0x159   :  { %p1717_p11 = por %p1716_p9, %p1715_p7 }
 0x15b   :  { %p1718_p10 = pnand %p1717_p11, %p1713_p3 }
 0x15d   :  { %1721 = shalt.err (!%p1718_p10)  }
 0x15e   :  { %s1722_s22 = scalar_lea.vmem %s2554_s19, 96  ;;  %p1727_p0 = scmp.lt.s32.totalorder %s2554_s19, %s2247_s14 }
 0x15f   :  { %p1723_p13 = scmp.ne.s32.totalorder %s2554_s19, %s1722_s22  ;;  %p1728_p1 = scmp.lt.s32.totalorder %s2278_s10, %s1722_s22 }
 0x161   :  { %p1729_p5 = por %p1728_p1, %p1727_p0 }
 0x163   :  { %p1730_p2 = pnand %p1729_p5, %p1723_p13 }
 0x165   :  { %1733 = shalt.err (!%p1730_p2)  }
 0x166   :  { %275 = dma.hbm_to_vmem [thread:$0]  %s268_s17, 96, %s2554_s19, [#allocation2 + $0xd], %s2194_s11, %s2194_s11, %s2195_s12 }
 0x167   :  { %s3103_s21 = smov (!%p1138_p4, %s279_s21), 2047  ;;  %s2208_s15 = smov [#allocation5 + $0x37]  }
 0x168   :  { %s298_s16 = scalar_select %p297_p8, %s2577_s28, 0 }
 0x169   :  { %s282_s4 = sshrl.u32 %s3103_s21, 3  ;;  %s283_s26 = sand.u32 7, %s3103_s21  }
 0x16a   :  { %s284_s0 = smul.u32 48, %s282_s4  ;;  %s310_s5 = sshll.u32 %s2208_s15, 4  ;;  %s2611_s5 = int_to_ptr.vmem [resolvable:$true] %s310_s5 }
 0x16b   :  { %s3105_s16 = smov (!%p1145_p6, %s298_s16), 2047 }
 0x16c   :  { %s285_s18 = sadd.s32 %s284_s0, %s283_s26  ;;  %s301_s7 = sshrl.u32 %s3105_s16, 3 }
 0x16d   :  { %s1143_s29 = sshll.u32 %s285_s18, 4  ;;  %s302_s25 = sand.u32 7, %s3105_s16  }
 0x16e   :  { %s287_s19 = scalar_lea.hbm %s3060_s1, %s1143_s29 }
 0x16f   :  { %s1734_s8 = scalar_lea.hbm %s287_s19, 96  ;;  %p1737_p8 = scmp.lt.s32.totalorder %s287_s19, %s3060_s1 }
 0x170   :  { %p1735_p4 = scmp.ne.s32.totalorder %s287_s19, %s1734_s8  ;;  %p1738_p3 = scmp.lt.s32.totalorder %s2269_s6, %s1734_s8 }
 0x172   :  { %p1739_p7 = por %p1738_p3, %p1737_p8 }
 0x174   :  { %p1740_p9 = pnand %p1739_p7, %p1735_p4 }
 0x176   :  { %1743 = shalt.err (!%p1740_p9)  }
 0x177   :  { %s1744_s28 = scalar_lea.vmem %s2583_s20, 96  ;;  %p1749_p11 = scmp.lt.s32.totalorder %s2583_s20, %s2247_s14 }
 0x178   :  { %p1745_p6 = scmp.ne.s32.totalorder %s2583_s20, %s1744_s28  ;;  %p1750_p10 = scmp.lt.s32.totalorder %s2278_s10, %s1744_s28 }
 0x17a   :  { %p1751_p13 = por %p1750_p10, %p1749_p11 }
 0x17c   :  { %p1752_p0 = pnand %p1751_p13, %p1745_p6 }
 0x17e   :  { %1755 = shalt.err (!%p1752_p0)  }
 0x17f   :  { %294 = dma.hbm_to_vmem [thread:$0]  %s287_s19, 96, %s2583_s20, [#allocation2 + $0xe], %s2194_s11, %s2194_s11, %s2195_s12 }
 0x180   :  { %s303_s21 = smul.u32 48, %s301_s7  ;;  %s2629_s17 = sld [smem:[#allocation4 + $0x10]] }
 0x181   :  { %s2631_s9 = sld [smem:[#allocation4 + $0x11]]  ;;  %s2209_s27 = smov [#allocation5 + $0x60]  }
 0x182   :  { %s304_s3 = sadd.s32 %s303_s21, %s302_s25  ;;  %s329_s22 = sshll.u32 %s2209_s27, 4  ;;  %s2633_s22 = int_to_ptr.vmem [resolvable:$true] %s329_s22 }
 0x183   :  { %s1150_s16 = sshll.u32 %s304_s3, 4 }
 0x184   :  { %s306_s0 = scalar_lea.hbm %s3060_s1, %s1150_s16 }
 0x185   :  { %s1756_s15 = scalar_lea.hbm %s306_s0, 96  ;;  %p1759_p5 = scmp.lt.s32.totalorder %s306_s0, %s3060_s1 }
 0x186   :  { %p1757_p1 = scmp.ne.s32.totalorder %s306_s0, %s1756_s15  ;;  %p1760_p2 = scmp.lt.s32.totalorder %s2269_s6, %s1756_s15 }
 0x188   :  { %p1761_p4 = por %p1760_p2, %p1759_p5 }
 0x18a   :  { %p1762_p8 = pnand %p1761_p4, %p1757_p1 }
 0x18c   :  { %1765 = shalt.err (!%p1762_p8)  }
 0x18d   :  { %s1766_s20 = scalar_lea.vmem %s2611_s5, 96  ;;  %p1771_p7 = scmp.lt.s32.totalorder %s2611_s5, %s2247_s14 }
 0x18e   :  { %p1767_p3 = scmp.ne.s32.totalorder %s2611_s5, %s1766_s20  ;;  %p1772_p9 = scmp.lt.s32.totalorder %s2278_s10, %s1766_s20 }
 0x190   :  { %p1773_p6 = por %p1772_p9, %p1771_p7 }
 0x192   :  { %p1774_p11 = pnand %p1773_p6, %p1767_p3 }
 0x194   :  { %1777 = shalt.err (!%p1774_p11)  }
 0x195   :  { %313 = dma.hbm_to_vmem [thread:$0]  %s306_s0, 96, %s2611_s5, [#allocation2 + $0xf], %s2194_s11, %s2194_s11, %s2195_s12 }
 0x196   :  { %p316_p10 = scmp.gt.s32.totalorder %s2629_s17, 0  ;;  %p1152_p13 = scmp.lt.s32.totalorder %s2629_s17, 2047 }
 0x197   :  { %p335_p0 = scmp.gt.s32.totalorder %s2631_s9, 0  ;;  %p1159_p1 = scmp.lt.s32.totalorder %s2631_s9, 2047 }
 0x198   :  { %s3107_s17 = smov (!%p316_p10, %s2629_s17), 0  ;;  %s2210_s24 = smov [#allocation5 + $0x61]  }
 0x199   :  { %s3109_s9 = smov (!%p335_p0, %s2631_s9), 0  ;;  %s3111_s17 = smov (!%p1152_p13, %s3107_s17), 2047 }
 0x19a   :  { %s3113_s9 = smov (!%p1159_p1, %s3109_s9), 2047  ;;  %s320_s7 = sshrl.u32 %s3111_s17, 3 }
 0x19b   :  { %s321_s13 = sand.u32 7, %s3111_s17   ;;  %s322_s30 = smul.u32 48, %s320_s7 }
 0x19c   :  { %s339_s19 = sshrl.u32 %s3113_s9, 3  ;;  %s340_s25 = sand.u32 7, %s3113_s9  }
 0x19d   :  { %s341_s8 = smul.u32 48, %s339_s19  ;;  %s323_s23 = sadd.s32 %s322_s30, %s321_s13 }
 0x19e   :  { %s348_s28 = sshll.u32 %s2210_s24, 4  ;;  %s1157_s21 = sshll.u32 %s323_s23, 4  ;;  %s349_s28 = int_to_ptr.vmem [resolvable:$true] %s348_s28 }
 0x19f   :  { %s342_s5 = sadd.s32 %s341_s8, %s340_s25  ;;  %s325_s16 = scalar_lea.hbm %s3060_s1, %s1157_s21 }
 0x1a0   :  { %s1164_s4 = sshll.u32 %s342_s5, 4  ;;  %s1778_s26 = scalar_lea.hbm %s325_s16, 96 }
 0x1a1   :  { %p1779_p5 = scmp.ne.s32.totalorder %s325_s16, %s1778_s26  ;;  %p1781_p2 = scmp.lt.s32.totalorder %s325_s16, %s3060_s1 }
 0x1a2   :  { %p1782_p4 = scmp.lt.s32.totalorder %s2269_s6, %s1778_s26 }
 0x1a4   :  { %p1783_p8 = por %p1782_p4, %p1781_p2 }
 0x1a6   :  { %p1784_p3 = pnand %p1783_p8, %p1779_p5 }
 0x1a8   :  { %1787 = shalt.err (!%p1784_p3)  }
 0x1a9   :  { %s1788_s17 = scalar_lea.vmem %s2633_s22, 96  ;;  %p1793_p9 = scmp.lt.s32.totalorder %s2633_s22, %s2247_s14 }
 0x1aa   :  { %p1789_p7 = scmp.ne.s32.totalorder %s2633_s22, %s1788_s17  ;;  %p1794_p6 = scmp.lt.s32.totalorder %s2278_s10, %s1788_s17 }
 0x1ac   :  { %p1795_p11 = por %p1794_p6, %p1793_p9 }
 0x1ae   :  { %p1796_p10 = pnand %p1795_p11, %p1789_p7 }
 0x1b0   :  { %1799 = shalt.err (!%p1796_p10)  }
 0x1b1   :  { %332 = dma.hbm_to_vmem [thread:$0]  %s325_s16, 96, %s2633_s22, [#allocation2 + $0x10], %s2194_s11, %s2194_s11, %s2195_s12 }
 0x1b2   :  { %s344_s29 = scalar_lea.hbm %s3060_s1, %s1164_s4 }
 0x1b3   :  { %s1800_s20 = scalar_lea.hbm %s344_s29, 96  ;;  %p1803_p0 = scmp.lt.s32.totalorder %s344_s29, %s3060_s1 }
 0x1b4   :  { %p1801_p13 = scmp.ne.s32.totalorder %s344_s29, %s1800_s20  ;;  %p1804_p1 = scmp.lt.s32.totalorder %s2269_s6, %s1800_s20 }
 0x1b6   :  { %p1805_p5 = por %p1804_p1, %p1803_p0 }
 0x1b8   :  { %p1806_p2 = pnand %p1805_p5, %p1801_p13 }
 0x1ba   :  { %1809 = shalt.err (!%p1806_p2)  }
 0x1bb   :  { %s1810_s30 = scalar_lea.vmem %s349_s28, 96  ;;  %p1815_p8 = scmp.lt.s32.totalorder %s349_s28, %s2247_s14 }
 0x1bc   :  { %p1811_p4 = scmp.ne.s32.totalorder %s349_s28, %s1810_s30  ;;  %p1816_p3 = scmp.lt.s32.totalorder %s2278_s10, %s1810_s30 }
 0x1be   :  { %p1817_p7 = por %p1816_p3, %p1815_p8 }
 0x1c0   :  { %p1818_p9 = pnand %p1817_p7, %p1811_p4 }
 0x1c2   :  { %1821 = shalt.err (!%p1818_p9)  }
 0x1c3   :  { %351 = dma.hbm_to_vmem [thread:$0]  %s344_s29, 96, %s349_s28, [#allocation2 + $0x11], %s2194_s11, %s2194_s11, %s2195_s12 }
 0x1c4   :  { %s1165_s22 = sld [smem:[#allocation4 + $0x12]]  ;;  %s2211_s19 = smov [#allocation5 + $0x62]  }
 0x1c5   :  { %s367_s25 = sshll.u32 %s2211_s19, 4  ;;  %s1172_s8 = sld [smem:[#allocation4 + $0x13]]  ;;  %s2685_s25 = int_to_ptr.vmem [resolvable:$true] %s367_s25 }
 0x1c6   :  { %s2212_s23 = smov [#allocation5 + $0x63]   ;;  %s2687_s21 = sld [smem:[#allocation4 + $0x14]] }
 0x1c7   :  { %s386_s24 = sshll.u32 %s2212_s23, 4  ;;  %s2213_s5 = smov [#allocation5 + $0x64]   ;;  %s2689_s24 = int_to_ptr.vmem [resolvable:$true] %s386_s24 }
 0x1c8   :  { %s2691_s3 = sshll.u32 %s2213_s5, 4  ;;  %s2693_s27 = sld [smem:[#allocation4 + $0x15]]  ;;  %s2733_s3 = int_to_ptr.vmem [resolvable:$true] %s2691_s3 }
 0x1ca   :  { %p354_p6 = scmp.gt.s32.totalorder %s1165_s22, 0  ;;  %p1166_p11 = scmp.lt.s32.totalorder %s1165_s22, 2047 }
 0x1cb   :  { %p373_p10 = scmp.gt.s32.totalorder %s1172_s8, 0  ;;  %p1173_p13 = scmp.lt.s32.totalorder %s1172_s8, 2047 }
 0x1cc   :  { %s3115_s22 = smov (!%p354_p6, %s1165_s22), 0  ;;  %p392_p0 = scmp.gt.s32.totalorder %s2687_s21, 0 }
 0x1cd   :  { %s3117_s8 = smov (!%p373_p10, %s1172_s8), 0  ;;  %s3119_s22 = smov (!%p1166_p11, %s3115_s22), 2047 }
 0x1ce   :  { %s3121_s8 = smov (!%p1173_p13, %s3117_s8), 2047  ;;  %s358_s28 = sshrl.u32 %s3119_s22, 3 }
 0x1cf   :  { %s359_s16 = sand.u32 7, %s3119_s22   ;;  %s360_s4 = smul.u32 48, %s358_s28 }
 0x1d0   :  { %s377_s26 = sshrl.u32 %s3121_s8, 3  ;;  %s378_s0 = sand.u32 7, %s3121_s8  }
 0x1d1   :  { %s379_s15 = smul.u32 48, %s377_s26  ;;  %s361_s17 = sadd.s32 %s360_s4, %s359_s16 }
 0x1d2   :  { %s1171_s9 = sshll.u32 %s361_s17, 4 }
 0x1d3   :  { %s380_s18 = sadd.s32 %s379_s15, %s378_s0  ;;  %s363_s7 = scalar_lea.hbm %s3060_s1, %s1171_s9 }
 0x1d4   :  { %s1178_s13 = sshll.u32 %s380_s18, 4  ;;  %s1822_s30 = scalar_lea.hbm %s363_s7, 96 }
 0x1d5   :  { %p1823_p1 = scmp.ne.s32.totalorder %s363_s7, %s1822_s30  ;;  %p1825_p5 = scmp.lt.s32.totalorder %s363_s7, %s3060_s1 }
 0x1d6   :  { %p1826_p2 = scmp.lt.s32.totalorder %s2269_s6, %s1822_s30 }
 0x1d8   :  { %p1827_p4 = por %p1826_p2, %p1825_p5 }
 0x1da   :  { %p1828_p8 = pnand %p1827_p4, %p1823_p1 }
 0x1dc   :  { %1831 = shalt.err (!%p1828_p8)  }
 0x1dd   :  { %s1832_s22 = scalar_lea.vmem %s2685_s25, 96  ;;  %p1837_p7 = scmp.lt.s32.totalorder %s2685_s25, %s2247_s14 }
 0x1de   :  { %p1833_p3 = scmp.ne.s32.totalorder %s2685_s25, %s1832_s22  ;;  %p1838_p9 = scmp.lt.s32.totalorder %s2278_s10, %s1832_s22 }
 0x1e0   :  { %p1839_p6 = por %p1838_p9, %p1837_p7 }
 0x1e2   :  { %p1840_p11 = pnand %p1839_p6, %p1833_p3 }
 0x1e4   :  { %1843 = shalt.err (!%p1840_p11)  }
 0x1e5   :  { %370 = dma.hbm_to_vmem [thread:$0]  %s363_s7, 96, %s2685_s25, [#allocation2 + $0x12], %s2194_s11, %s2194_s11, %s2195_s12 }
 0x1e6   :  { %s382_s28 = scalar_lea.hbm %s3060_s1, %s1178_s13  ;;  %p1180_p10 = scmp.lt.s32.totalorder %s2687_s21, 2047 }
 0x1e7   :  { %s1844_s16 = scalar_lea.hbm %s382_s28, 96  ;;  %p1847_p1 = scmp.lt.s32.totalorder %s382_s28, %s3060_s1 }
 0x1e8   :  { %p1845_p13 = scmp.ne.s32.totalorder %s382_s28, %s1844_s16  ;;  %p1848_p5 = scmp.lt.s32.totalorder %s2269_s6, %s1844_s16 }
 0x1ea   :  { %p1849_p2 = por %p1848_p5, %p1847_p1 }
 0x1ec   :  { %p1850_p4 = pnand %p1849_p2, %p1845_p13 }
 0x1ee   :  { %1853 = shalt.err (!%p1850_p4)  }
 0x1ef   :  { %s1854_s25 = scalar_lea.vmem %s2689_s24, 96  ;;  %p1859_p3 = scmp.lt.s32.totalorder %s2689_s24, %s2247_s14 }
 0x1f0   :  { %p1855_p8 = scmp.ne.s32.totalorder %s2689_s24, %s1854_s25  ;;  %p1860_p7 = scmp.lt.s32.totalorder %s2278_s10, %s1854_s25 }
 0x1f2   :  { %p1861_p9 = por %p1860_p7, %p1859_p3 }
 0x1f4   :  { %p1862_p6 = pnand %p1861_p9, %p1855_p8 }
 0x1f6   :  { %1865 = shalt.err (!%p1862_p6)  }
 0x1f7   :  { %389 = dma.hbm_to_vmem [thread:$0]  %s382_s28, 96, %s2689_s24, [#allocation2 + $0x13], %s2194_s11, %s2194_s11, %s2195_s12 }
 0x1f8   :  { %s393_s0 = scalar_select %p392_p0, %s2687_s21, 0 }
 0x1f9   :  { %p411_p11 = scmp.gt.s32.totalorder %s2693_s27, 0  ;;  %p1187_p13 = scmp.lt.s32.totalorder %s2693_s27, 2047 }
 0x1fa   :  { %s3123_s0 = smov (!%p1180_p10, %s393_s0), 2047  ;;  %s2742_s29 = sld [smem:[#allocation4 + $0x16]] }
 0x1fb   :  { %s2739_s15 = scalar_select %p411_p11, %s2693_s27, 0 }
 0x1fc   :  { %s396_s17 = sshrl.u32 %s3123_s0, 3  ;;  %s397_s9 = sand.u32 7, %s3123_s0  }
 0x1fd   :  { %s398_s18 = smul.u32 48, %s396_s17  ;;  %s2214_s7 = smov [#allocation5 + $0x65]  }
 0x1fe   :  { %s424_s13 = sshll.u32 %s2214_s7, 4  ;;  %s2744_s13 = int_to_ptr.vmem [resolvable:$true] %s424_s13 }
 0x1ff   :  { %s399_s20 = sadd.s32 %s398_s18, %s397_s9 }
 0x200   :  { %s1185_s24 = sshll.u32 %s399_s20, 4 }
 0x201   :  { %s401_s21 = scalar_lea.hbm %s3060_s1, %s1185_s24 }
 0x202   :  { %s1866_s23 = scalar_lea.hbm %s401_s21, 96  ;;  %p1869_p10 = scmp.lt.s32.totalorder %s401_s21, %s3060_s1 }
 0x203   :  { %p1867_p0 = scmp.ne.s32.totalorder %s401_s21, %s1866_s23  ;;  %p1870_p1 = scmp.lt.s32.totalorder %s2269_s6, %s1866_s23 }
 0x205   :  { %p1871_p5 = por %p1870_p1, %p1869_p10 }
 0x207   :  { %p1872_p2 = pnand %p1871_p5, %p1867_p0 }
 0x209   :  { %1875 = shalt.err (!%p1872_p2)  }
 0x20a   :  { %s1876_s5 = scalar_lea.vmem %s2733_s3, 96  ;;  %p1881_p8 = scmp.lt.s32.totalorder %s2733_s3, %s2247_s14 }
 0x20b   :  { %p1877_p4 = scmp.ne.s32.totalorder %s2733_s3, %s1876_s5  ;;  %p1882_p3 = scmp.lt.s32.totalorder %s2278_s10, %s1876_s5 }
 0x20d   :  { %p1883_p7 = por %p1882_p3, %p1881_p8 }
 0x20f   :  { %p1884_p9 = pnand %p1883_p7, %p1877_p4 }
 0x211   :  { %1887 = shalt.err (!%p1884_p9)  }
 0x212   :  { %408 = dma.hbm_to_vmem [thread:$0]  %s401_s21, 96, %s2733_s3, [#allocation2 + $0x14], %s2194_s11, %s2194_s11, %s2195_s12 }
 0x213   :  { %s3125_s15 = smov (!%p1187_p13, %s2739_s15), 2047  ;;  %p430_p6 = scmp.gt.s32.totalorder %s2742_s29, 0 }
 0x214   :  { %p1194_p11 = scmp.lt.s32.totalorder %s2742_s29, 2047  ;;  %s415_s28 = sshrl.u32 %s3125_s15, 3 }
 0x215   :  { %s416_s16 = sand.u32 7, %s3125_s15   ;;  %s417_s4 = smul.u32 48, %s415_s28 }
 0x216   :  { %s2215_s26 = smov [#allocation5 + $0x66]   ;;  %s2770_s18 = sld [smem:[#allocation4 + $0x17]] }
 0x217   :  { %s443_s25 = sshll.u32 %s2215_s26, 4  ;;  %s418_s17 = sadd.s32 %s417_s4, %s416_s16  ;;  %s2768_s25 = int_to_ptr.vmem [resolvable:$true] %s443_s25 }
 0x218   :  { %s431_s0 = scalar_select %p430_p6, %s2742_s29, 0 }
 0x219   :  { %s1192_s9 = sshll.u32 %s418_s17, 4 }
 0x21a   :  { %s420_s3 = scalar_lea.hbm %s3060_s1, %s1192_s9 }
 0x21b   :  { %s1888_s27 = scalar_lea.hbm %s420_s3, 96  ;;  %p1891_p0 = scmp.lt.s32.totalorder %s420_s3, %s3060_s1 }
 0x21c   :  { %p1889_p13 = scmp.ne.s32.totalorder %s420_s3, %s1888_s27  ;;  %p1892_p10 = scmp.lt.s32.totalorder %s2269_s6, %s1888_s27 }
 0x21e   :  { %p1893_p1 = por %p1892_p10, %p1891_p0 }
 0x220   :  { %p1894_p5 = pnand %p1893_p1, %p1889_p13 }
 0x222   :  { %1897 = shalt.err (!%p1894_p5)  }
 0x223   :  { %s1898_s15 = scalar_lea.vmem %s2744_s13, 96  ;;  %p1903_p4 = scmp.lt.s32.totalorder %s2744_s13, %s2247_s14 }
 0x224   :  { %p1899_p2 = scmp.ne.s32.totalorder %s2744_s13, %s1898_s15  ;;  %p1904_p8 = scmp.lt.s32.totalorder %s2278_s10, %s1898_s15 }
 0x226   :  { %p1905_p3 = por %p1904_p8, %p1903_p4 }
 0x228   :  { %p1906_p7 = pnand %p1905_p3, %p1899_p2 }
 0x22a   :  { %1909 = shalt.err (!%p1906_p7)  }
 0x22b   :  { %427 = dma.hbm_to_vmem [thread:$0]  %s420_s3, 96, %s2744_s13, [#allocation2 + $0x15], %s2194_s11, %s2194_s11, %s2195_s12 }
 0x22c   :  { %s3127_s0 = smov (!%p1194_p11, %s431_s0), 2047  ;;  %s2216_s19 = smov [#allocation5 + $0x67]  }
 0x22d   :  { %s462_s21 = sshll.u32 %s2216_s19, 4  ;;  %s2790_s23 = sld [smem:[#allocation4 + $0x18]]  ;;  %s2794_s21 = int_to_ptr.vmem [resolvable:$true] %s462_s21 }
 0x22e   :  { %s434_s22 = sshrl.u32 %s3127_s0, 3  ;;  %s435_s8 = sand.u32 7, %s3127_s0  }
 0x22f   :  { %s436_s5 = smul.u32 48, %s434_s22  ;;  %p449_p9 = scmp.gt.s32.totalorder %s2770_s18, 0 }
 0x230   :  { %p1201_p6 = scmp.lt.s32.totalorder %s2770_s18, 2047  ;;  %s2217_s4 = smov [#allocation5 + $0x90]  }
 0x231   :  { %s437_s28 = sadd.s32 %s436_s5, %s435_s8  ;;  %s481_s26 = sshll.u32 %s2217_s4, 4  ;;  %s2822_s26 = int_to_ptr.vmem [resolvable:$true] %s481_s26 }
 0x232   :  { %s1199_s16 = sshll.u32 %s437_s28, 4 }
 0x233   :  { %s439_s17 = scalar_lea.hbm %s3060_s1, %s1199_s16  ;;  %p468_p11 = scmp.gt.s32.totalorder %s2790_s23, 0 }
 0x234   :  { %s1910_s9 = scalar_lea.hbm %s439_s17, 96  ;;  %p1913_p0 = scmp.lt.s32.totalorder %s439_s17, %s3060_s1 }
 0x235   :  { %p1911_p13 = scmp.ne.s32.totalorder %s439_s17, %s1910_s9  ;;  %p1914_p10 = scmp.lt.s32.totalorder %s2269_s6, %s1910_s9 }
 0x237   :  { %p1915_p1 = por %p1914_p10, %p1913_p0 }
 0x239   :  { %p1916_p5 = pnand %p1915_p1, %p1911_p13 }
 0x23b   :  { %1919 = shalt.err (!%p1916_p5)  }
 0x23c   :  { %s1920_s0 = scalar_lea.vmem %s2768_s25, 96  ;;  %p1925_p4 = scmp.lt.s32.totalorder %s2768_s25, %s2247_s14 }
 0x23d   :  { %p1921_p2 = scmp.ne.s32.totalorder %s2768_s25, %s1920_s0  ;;  %p1926_p8 = scmp.lt.s32.totalorder %s2278_s10, %s1920_s0 }
 0x23f   :  { %p1927_p3 = por %p1926_p8, %p1925_p4 }
 0x241   :  { %p1928_p7 = pnand %p1927_p3, %p1921_p2 }
 0x243   :  { %1931 = shalt.err (!%p1928_p7)  }
 0x244   :  { %446 = dma.hbm_to_vmem [thread:$0]  %s439_s17, 96, %s2768_s25, [#allocation2 + $0x16], %s2194_s11, %s2194_s11, %s2195_s12 }
 0x245   :  { %s450_s3 = scalar_select %p449_p9, %s2770_s18, 0 }
 0x246   :  { %s469_s27 = scalar_select %p468_p11, %s2790_s23, 0 }
 0x247   :  { %s3129_s3 = smov (!%p1201_p6, %s450_s3), 2047  ;;  %p1208_p13 = scmp.lt.s32.totalorder %s2790_s23, 2047 }
 0x248   :  { %s453_s24 = sshrl.u32 %s3129_s3, 3  ;;  %s454_s30 = sand.u32 7, %s3129_s3  }
 0x249   :  { %s455_s15 = smul.u32 48, %s453_s24  ;;  %s2824_s19 = sld [smem:[#allocation4 + $0x19]] }
 0x24a   :  { %s3131_s27 = smov (!%p1208_p13, %s469_s27), 2047 }
 0x24b   :  { %s456_s22 = sadd.s32 %s455_s15, %s454_s30  ;;  %s472_s5 = sshrl.u32 %s3131_s27, 3 }
 0x24c   :  { %s1206_s8 = sshll.u32 %s456_s22, 4  ;;  %s473_s4 = sand.u32 7, %s3131_s27  }
 0x24d   :  { %s458_s16 = scalar_lea.hbm %s3060_s1, %s1206_s8 }
 0x24e   :  { %s1932_s18 = scalar_lea.hbm %s458_s16, 96  ;;  %p1935_p6 = scmp.lt.s32.totalorder %s458_s16, %s3060_s1 }
 0x24f   :  { %p1933_p9 = scmp.ne.s32.totalorder %s458_s16, %s1932_s18  ;;  %p1936_p11 = scmp.lt.s32.totalorder %s2269_s6, %s1932_s18 }
 0x251   :  { %p1937_p0 = por %p1936_p11, %p1935_p6 }
 0x253   :  { %p1938_p10 = pnand %p1937_p0, %p1933_p9 }
 0x255   :  { %1941 = shalt.err (!%p1938_p10)  }
 0x256   :  { %s1942_s29 = scalar_lea.vmem %s2794_s21, 96  ;;  %p1947_p5 = scmp.lt.s32.totalorder %s2794_s21, %s2247_s14 }
 0x257   :  { %p1943_p1 = scmp.ne.s32.totalorder %s2794_s21, %s1942_s29  ;;  %p1948_p2 = scmp.lt.s32.totalorder %s2278_s10, %s1942_s29 }
 0x259   :  { %p1949_p4 = por %p1948_p2, %p1947_p5 }
 0x25b   :  { %p1950_p8 = pnand %p1949_p4, %p1943_p1 }
 0x25d   :  { %1953 = shalt.err (!%p1950_p8)  }
 0x25e   :  { %465 = dma.hbm_to_vmem [thread:$0]  %s458_s16, 96, %s2794_s21, [#allocation2 + $0x17], %s2194_s11, %s2194_s11, %s2195_s12 }
 0x25f   :  { %s474_s17 = smul.u32 48, %s472_s5  ;;  %p487_p3 = scmp.gt.s32.totalorder %s2824_s19, 0 }
 0x260   :  { %p1215_p7 = scmp.lt.s32.totalorder %s2824_s19, 2047  ;;  %s2218_s9 = smov [#allocation5 + $0x91]  }
 0x261   :  { %s500_s20 = sshll.u32 %s2218_s9, 4  ;;  %s475_s7 = sadd.s32 %s474_s17, %s473_s4  ;;  %s2844_s20 = int_to_ptr.vmem [resolvable:$true] %s500_s20 }
 0x262   :  { %s1213_s0 = sshll.u32 %s475_s7, 4  ;;  %s2846_s3 = sld [smem:[#allocation4 + $0x1a]] }
 0x263   :  { %s477_s30 = scalar_lea.hbm %s3060_s1, %s1213_s0 }
 0x264   :  { %s1954_s15 = scalar_lea.hbm %s477_s30, 96  ;;  %p1957_p9 = scmp.lt.s32.totalorder %s477_s30, %s3060_s1 }
 0x265   :  { %p1955_p13 = scmp.ne.s32.totalorder %s477_s30, %s1954_s15  ;;  %p1958_p6 = scmp.lt.s32.totalorder %s2269_s6, %s1954_s15 }
 0x267   :  { %p1959_p11 = por %p1958_p6, %p1957_p9 }
 0x269   :  { %p1960_p0 = pnand %p1959_p11, %p1955_p13 }
 0x26b   :  { %1963 = shalt.err (!%p1960_p0)  }
 0x26c   :  { %s1964_s21 = scalar_lea.vmem %s2822_s26, 96  ;;  %p1969_p1 = scmp.lt.s32.totalorder %s2822_s26, %s2247_s14 }
 0x26d   :  { %p1965_p10 = scmp.ne.s32.totalorder %s2822_s26, %s1964_s21  ;;  %p1970_p5 = scmp.lt.s32.totalorder %s2278_s10, %s1964_s21 }
 0x26f   :  { %p1971_p2 = por %p1970_p5, %p1969_p1 }
 0x271   :  { %p1972_p4 = pnand %p1971_p2, %p1965_p10 }
 0x273   :  { %1975 = shalt.err (!%p1972_p4)  }
 0x274   :  { %484 = dma.hbm_to_vmem [thread:$0]  %s477_s30, 96, %s2822_s26, [#allocation2 + $0x18], %s2194_s11, %s2194_s11, %s2195_s12 }
 0x275   :  { %s488_s5 = scalar_select %p487_p3, %s2824_s19, 0 }
 0x276   :  { %s2219_s25 = smov [#allocation5 + $0x92]   ;;  %s2867_s16 = sld [smem:[#allocation4 + $0x1b]] }
 0x277   :  { %s519_s28 = sshll.u32 %s2219_s25, 4  ;;  %s3133_s5 = smov (!%p1215_p7, %s488_s5), 2047  ;;  %s2873_s28 = int_to_ptr.vmem [resolvable:$true] %s519_s28 }
 0x278   :  { %p506_p8 = scmp.gt.s32.totalorder %s2846_s3, 0  ;;  %p1222_p13 = scmp.lt.s32.totalorder %s2846_s3, 2047 }
 0x279   :  { %s491_s4 = sshrl.u32 %s3133_s5, 3  ;;  %s492_s18 = sand.u32 7, %s3133_s5  }
 0x27a   :  { %s493_s13 = smul.u32 48, %s491_s4 }
 0x27b   :  { %s507_s23 = scalar_select %p506_p8, %s2846_s3, 0 }
 0x27c   :  { %s494_s26 = sadd.s32 %s493_s13, %s492_s18  ;;  %p525_p9 = scmp.gt.s32.totalorder %s2867_s16, 0 }
 0x27d   :  { %s1220_s29 = sshll.u32 %s494_s26, 4  ;;  %p1229_p3 = scmp.lt.s32.totalorder %s2867_s16, 2047 }
 0x27e   :  { %s496_s19 = scalar_lea.hbm %s3060_s1, %s1220_s29 }
 0x27f   :  { %s1976_s7 = scalar_lea.hbm %s496_s19, 96  ;;  %p1979_p7 = scmp.lt.s32.totalorder %s496_s19, %s3060_s1 }
 0x280   :  { %p1977_p6 = scmp.ne.s32.totalorder %s496_s19, %s1976_s7  ;;  %p1980_p11 = scmp.lt.s32.totalorder %s2269_s6, %s1976_s7 }
 0x282   :  { %p1981_p0 = por %p1980_p11, %p1979_p7 }
 0x284   :  { %p1982_p10 = pnand %p1981_p0, %p1977_p6 }
 0x286   :  { %1985 = shalt.err (!%p1982_p10)  }
 0x287   :  { %s1986_s24 = scalar_lea.vmem %s2844_s20, 96  ;;  %p1991_p5 = scmp.lt.s32.totalorder %s2844_s20, %s2247_s14 }
 0x288   :  { %p1987_p1 = scmp.ne.s32.totalorder %s2844_s20, %s1986_s24  ;;  %p1992_p2 = scmp.lt.s32.totalorder %s2278_s10, %s1986_s24 }
 0x28a   :  { %p1993_p4 = por %p1992_p2, %p1991_p5 }
 0x28c   :  { %p1994_p8 = pnand %p1993_p4, %p1987_p1 }
 0x28e   :  { %1997 = shalt.err (!%p1994_p8)  }
 0x28f   :  { %503 = dma.hbm_to_vmem [thread:$0]  %s496_s19, 96, %s2844_s20, [#allocation2 + $0x19], %s2194_s11, %s2194_s11, %s2195_s12 }
 0x290   :  { %s3135_s23 = smov (!%p1222_p13, %s507_s23), 2047  ;;  %s2220_s21 = smov [#allocation5 + $0x93]  }
 0x291   :  { %s526_s30 = scalar_select %p525_p9, %s2867_s16, 0 }
 0x292   :  { %s510_s15 = sshrl.u32 %s3135_s23, 3  ;;  %s511_s22 = sand.u32 7, %s3135_s23  }
 0x293   :  { %s512_s8 = smul.u32 48, %s510_s15  ;;  %s538_s5 = sshll.u32 %s2220_s21, 4  ;;  %s2901_s5 = int_to_ptr.vmem [resolvable:$true] %s538_s5 }
 0x294   :  { %s3137_s30 = smov (!%p1229_p3, %s526_s30), 2047 }
 0x295   :  { %s513_s25 = sadd.s32 %s512_s8, %s511_s22  ;;  %s529_s18 = sshrl.u32 %s3137_s30, 3 }
 0x296   :  { %s1227_s4 = sshll.u32 %s513_s25, 4  ;;  %s530_s3 = sand.u32 7, %s3137_s30  }
 0x297   :  { %s515_s20 = scalar_lea.hbm %s3060_s1, %s1227_s4 }
 0x298   :  { %s1998_s29 = scalar_lea.hbm %s515_s20, 96  ;;  %p2001_p9 = scmp.lt.s32.totalorder %s515_s20, %s3060_s1 }
 0x299   :  { %p1999_p13 = scmp.ne.s32.totalorder %s515_s20, %s1998_s29  ;;  %p2002_p6 = scmp.lt.s32.totalorder %s2269_s6, %s1998_s29 }
 0x29b   :  { %p2003_p7 = por %p2002_p6, %p2001_p9 }
 0x29d   :  { %p2004_p11 = pnand %p2003_p7, %p1999_p13 }
 0x29f   :  { %2007 = shalt.err (!%p2004_p11)  }
 0x2a0   :  { %s2008_s16 = scalar_lea.vmem %s2873_s28, 96  ;;  %p2013_p0 = scmp.lt.s32.totalorder %s2873_s28, %s2247_s14 }
 0x2a1   :  { %p2009_p3 = scmp.ne.s32.totalorder %s2873_s28, %s2008_s16  ;;  %p2014_p10 = scmp.lt.s32.totalorder %s2278_s10, %s2008_s16 }
 0x2a3   :  { %p2015_p1 = por %p2014_p10, %p2013_p0 }
 0x2a5   :  { %p2016_p5 = pnand %p2015_p1, %p2009_p3 }
 0x2a7   :  { %2019 = shalt.err (!%p2016_p5)  }
 0x2a8   :  { %522 = dma.hbm_to_vmem [thread:$0]  %s515_s20, 96, %s2873_s28, [#allocation2 + $0x1a], %s2194_s11, %s2194_s11, %s2195_s12 }
 0x2a9   :  { %s531_s23 = smul.u32 48, %s529_s18  ;;  %s2919_s19 = sld [smem:[#allocation4 + $0x1c]] }
 0x2aa   :  { %s2921_s7 = sld [smem:[#allocation4 + $0x1d]]  ;;  %s2221_s27 = smov [#allocation5 + $0x94]  }
 0x2ab   :  { %s532_s0 = sadd.s32 %s531_s23, %s530_s3  ;;  %s557_s24 = sshll.u32 %s2221_s27, 4  ;;  %s2923_s24 = int_to_ptr.vmem [resolvable:$true] %s557_s24 }
 0x2ac   :  { %s1234_s30 = sshll.u32 %s532_s0, 4 }
 0x2ad   :  { %s534_s8 = scalar_lea.hbm %s3060_s1, %s1234_s30 }
 0x2ae   :  { %s2020_s21 = scalar_lea.hbm %s534_s8, 96  ;;  %p2023_p4 = scmp.lt.s32.totalorder %s534_s8, %s3060_s1 }
 0x2af   :  { %p2021_p2 = scmp.ne.s32.totalorder %s534_s8, %s2020_s21  ;;  %p2024_p8 = scmp.lt.s32.totalorder %s2269_s6, %s2020_s21 }
 0x2b1   :  { %p2025_p13 = por %p2024_p8, %p2023_p4 }
 0x2b3   :  { %p2026_p9 = pnand %p2025_p13, %p2021_p2 }
 0x2b5   :  { %2029 = shalt.err (!%p2026_p9)  }
 0x2b6   :  { %s2030_s28 = scalar_lea.vmem %s2901_s5, 96  ;;  %p2035_p7 = scmp.lt.s32.totalorder %s2901_s5, %s2247_s14 }
 0x2b7   :  { %p2031_p6 = scmp.ne.s32.totalorder %s2901_s5, %s2030_s28  ;;  %p2036_p11 = scmp.lt.s32.totalorder %s2278_s10, %s2030_s28 }
 0x2b9   :  { %p2037_p3 = por %p2036_p11, %p2035_p7 }
 0x2bb   :  { %p2038_p0 = pnand %p2037_p3, %p2031_p6 }
 0x2bd   :  { %2041 = shalt.err (!%p2038_p0)  }
 0x2be   :  { %541 = dma.hbm_to_vmem [thread:$0]  %s534_s8, 96, %s2901_s5, [#allocation2 + $0x1b], %s2194_s11, %s2194_s11, %s2195_s12 }
 0x2bf   :  { %p544_p10 = scmp.gt.s32.totalorder %s2919_s19, 0  ;;  %p1236_p1 = scmp.lt.s32.totalorder %s2919_s19, 2047 }
 0x2c0   :  { %p563_p5 = scmp.gt.s32.totalorder %s2921_s7, 0  ;;  %p1243_p2 = scmp.lt.s32.totalorder %s2921_s7, 2047 }
 0x2c1   :  { %s3139_s19 = smov (!%p544_p10, %s2919_s19), 0  ;;  %s2222_s9 = smov [#allocation5 + $0x95]  }
 0x2c2   :  { %s3141_s7 = smov (!%p563_p5, %s2921_s7), 0  ;;  %s3143_s19 = smov (!%p1236_p1, %s3139_s19), 2047 }
 0x2c3   :  { %s3145_s7 = smov (!%p1243_p2, %s3141_s7), 2047  ;;  %s548_s18 = sshrl.u32 %s3143_s19, 3 }
 0x2c4   :  { %s549_s13 = sand.u32 7, %s3143_s19   ;;  %s550_s26 = smul.u32 48, %s548_s18 }
 0x2c5   :  { %s567_s20 = sshrl.u32 %s3145_s7, 3  ;;  %s568_s3 = sand.u32 7, %s3145_s7  }
 0x2c6   :  { %s569_s29 = smul.u32 48, %s567_s20  ;;  %s551_s17 = sadd.s32 %s550_s26, %s549_s13 }
 0x2c7   :  { %s576_s16 = sshll.u32 %s2222_s9, 4  ;;  %s1241_s23 = sshll.u32 %s551_s17, 4  ;;  %s577_s16 = int_to_ptr.vmem [resolvable:$true] %s576_s16 }
 0x2c8   :  { %s570_s5 = sadd.s32 %s569_s29, %s568_s3  ;;  %s553_s30 = scalar_lea.hbm %s3060_s1, %s1241_s23 }
 0x2c9   :  { %s1248_s15 = sshll.u32 %s570_s5, 4  ;;  %s2042_s22 = scalar_lea.hbm %s553_s30, 96 }
 0x2ca   :  { %p2043_p4 = scmp.ne.s32.totalorder %s553_s30, %s2042_s22  ;;  %p2045_p8 = scmp.lt.s32.totalorder %s553_s30, %s3060_s1 }
 0x2cb   :  { %p2046_p13 = scmp.lt.s32.totalorder %s2269_s6, %s2042_s22 }
 0x2cd   :  { %p2047_p9 = por %p2046_p13, %p2045_p8 }
 0x2cf   :  { %p2048_p6 = pnand %p2047_p9, %p2043_p4 }
 0x2d1   :  { %2051 = shalt.err (!%p2048_p6)  }
 0x2d2   :  { %s2052_s19 = scalar_lea.vmem %s2923_s24, 96  ;;  %p2057_p11 = scmp.lt.s32.totalorder %s2923_s24, %s2247_s14 }
 0x2d3   :  { %p2053_p7 = scmp.ne.s32.totalorder %s2923_s24, %s2052_s19  ;;  %p2058_p3 = scmp.lt.s32.totalorder %s2278_s10, %s2052_s19 }
 0x2d5   :  { %p2059_p0 = por %p2058_p3, %p2057_p11 }
 0x2d7   :  { %p2060_p10 = pnand %p2059_p0, %p2053_p7 }
 0x2d9   :  { %2063 = shalt.err (!%p2060_p10)  }
 0x2da   :  { %560 = dma.hbm_to_vmem [thread:$0]  %s553_s30, 96, %s2923_s24, [#allocation2 + $0x1c], %s2194_s11, %s2194_s11, %s2195_s12 }
 0x2db   :  { %s572_s4 = scalar_lea.hbm %s3060_s1, %s1248_s15 }
 0x2dc   :  { %s2064_s28 = scalar_lea.hbm %s572_s4, 96  ;;  %p2067_p5 = scmp.lt.s32.totalorder %s572_s4, %s3060_s1 }
 0x2dd   :  { %p2065_p1 = scmp.ne.s32.totalorder %s572_s4, %s2064_s28  ;;  %p2068_p2 = scmp.lt.s32.totalorder %s2269_s6, %s2064_s28 }
 0x2df   :  { %p2069_p4 = por %p2068_p2, %p2067_p5 }
 0x2e1   :  { %p2070_p8 = pnand %p2069_p4, %p2065_p1 }
 0x2e3   :  { %2073 = shalt.err (!%p2070_p8)  }
 0x2e4   :  { %s2074_s26 = scalar_lea.vmem %s577_s16, 96  ;;  %p2079_p9 = scmp.lt.s32.totalorder %s577_s16, %s2247_s14 }
 0x2e5   :  { %p2075_p13 = scmp.ne.s32.totalorder %s577_s16, %s2074_s26  ;;  %p2080_p6 = scmp.lt.s32.totalorder %s2278_s10, %s2074_s26 }
 0x2e7   :  { %p2081_p7 = por %p2080_p6, %p2079_p9 }
 0x2e9   :  { %p2082_p11 = pnand %p2081_p7, %p2075_p13 }
 0x2eb   :  { %2085 = shalt.err (!%p2082_p11)  }
 0x2ec   :  { %579 = dma.hbm_to_vmem [thread:$0]  %s572_s4, 96, %s577_s16, [#allocation2 + $0x1d], %s2194_s11, %s2194_s11, %s2195_s12 }
 0x2ed   :  { %s1249_s24 = sld [smem:[#allocation4 + $0x1e]]  ;;  %s2223_s3 = smov [#allocation5 + $0x96]  }
 0x2ee   :  { %s1256_s20 = sld [smem:[#allocation4 + $0x1f]]  ;;  %s595_s29 = sshll.u32 %s2223_s3, 4  ;;  %s2975_s29 = int_to_ptr.vmem [resolvable:$true] %s595_s29 }
 0x2ef   :  { %s2224_s17 = smov [#allocation5 + $0x97]  }
 0x2f0   :  { %s614_s9 = sshll.u32 %s2224_s17, 4  ;;  %s2977_s9 = int_to_ptr.vmem [resolvable:$true] %s614_s9 }
 0x2f3   :  { %p582_p3 = scmp.gt.s32.totalorder %s1249_s24, 0  ;;  %p1250_p0 = scmp.lt.s32.totalorder %s1249_s24, 2047 }
 0x2f4   :  { %p601_p10 = scmp.gt.s32.totalorder %s1256_s20, 0  ;;  %p1257_p1 = scmp.lt.s32.totalorder %s1256_s20, 2047 }
 0x2f5   :  { %s3147_s24 = smov (!%p582_p3, %s1249_s24), 0 }
 0x2f6   :  { %s3149_s20 = smov (!%p601_p10, %s1256_s20), 0  ;;  %s3151_s24 = smov (!%p1250_p0, %s3147_s24), 2047 }
 0x2f7   :  { %s3153_s20 = smov (!%p1257_p1, %s3149_s20), 2047  ;;  %s586_s23 = sshrl.u32 %s3151_s24, 3 }
 0x2f8   :  { %s587_s5 = sand.u32 7, %s3151_s24   ;;  %s588_s16 = smul.u32 48, %s586_s23 }
 0x2f9   :  { %s605_s0 = sshrl.u32 %s3153_s20, 3  ;;  %s606_s27 = sand.u32 7, %s3153_s20  }
 0x2fa   :  { %s607_s30 = smul.u32 48, %s605_s0  ;;  %s589_s15 = sadd.s32 %s588_s16, %s587_s5 }
 0x2fb   :  { %s1255_s22 = sshll.u32 %s589_s15, 4 }
 0x2fc   :  { %s608_s8 = sadd.s32 %s607_s30, %s606_s27  ;;  %s591_s7 = scalar_lea.hbm %s3060_s1, %s1255_s22 }
 0x2fd   :  { %s1262_s25 = sshll.u32 %s608_s8, 4  ;;  %s2086_s4 = scalar_lea.hbm %s591_s7, 96 }
 0x2fe   :  { %p2087_p5 = scmp.ne.s32.totalorder %s591_s7, %s2086_s4  ;;  %p2089_p2 = scmp.lt.s32.totalorder %s591_s7, %s3060_s1 }
 0x2ff   :  { %p2090_p4 = scmp.lt.s32.totalorder %s2269_s6, %s2086_s4 }
 0x301   :  { %p2091_p8 = por %p2090_p4, %p2089_p2 }
 0x303   :  { %p2092_p13 = pnand %p2091_p8, %p2087_p5 }
 0x305   :  { %2095 = shalt.err (!%p2092_p13)  }
 0x306   :  { %s2096_s13 = scalar_lea.vmem %s2975_s29, 96  ;;  %p2101_p6 = scmp.lt.s32.totalorder %s2975_s29, %s2247_s14 }
 0x307   :  { %p2097_p9 = scmp.ne.s32.totalorder %s2975_s29, %s2096_s13  ;;  %p2102_p7 = scmp.lt.s32.totalorder %s2278_s10, %s2096_s13 }
 0x309   :  { %p2103_p11 = por %p2102_p7, %p2101_p6 }
 0x30b   :  { %p2104_p3 = pnand %p2103_p11, %p2097_p9 }
 0x30d   :  { %2107 = shalt.err (!%p2104_p3)  }
 0x30e   :  { %598 = dma.hbm_to_vmem [thread:$0]  %s591_s7, 96, %s2975_s29, [#allocation2 + $0x1e], %s2194_s11, %s2194_s11, %s2195_s12 }
 0x30f   :  { %s610_s20 = scalar_lea.hbm %s3060_s1, %s1262_s25 }
 0x310   :  { %s2108_s3 = scalar_lea.hbm %s610_s20, 96  ;;  %p2111_p10 = scmp.lt.s32.totalorder %s610_s20, %s3060_s1 }
 0x311   :  { %p2109_p0 = scmp.ne.s32.totalorder %s610_s20, %s2108_s3  ;;  %p2112_p1 = scmp.lt.s32.totalorder %s2269_s6, %s2108_s3 }
 0x313   :  { %p2113_p5 = por %p2112_p1, %p2111_p10 }
 0x315   :  { %p2114_p2 = pnand %p2113_p5, %p2109_p0 }
 0x317   :  { %2117 = shalt.err (!%p2114_p2)  }
 0x318   :  { %s2118_s29 = scalar_lea.vmem %s2977_s9, 96  ;;  %p2123_p8 = scmp.lt.s32.totalorder %s2977_s9, %s2247_s14 }
 0x319   :  { %p2119_p4 = scmp.ne.s32.totalorder %s2977_s9, %s2118_s29  ;;  %p2124_p13 = scmp.lt.s32.totalorder %s2278_s10, %s2118_s29 }
 0x31b   :  { %p2125_p9 = por %p2124_p13, %p2123_p8 }
 0x31d   :  { %p2126_p6 = pnand %p2125_p9, %p2119_p4 }
 0x31f   :  { %2129 = shalt.err (!%p2126_p6)  }
 0x320   :  { %617 = dma.hbm_to_vmem [thread:$0]  %s610_s20, 96, %s2977_s9, [#allocation2 + $0x1f], %s2194_s11, %s2194_s11, %s2195_s12 }
 0x321   :  { %s3011_s5 = smov 0  }
 0x322 LB: > { %s624_s16 = sand.u32 31, %s2188_s5  ;;  %s3018_s0 = sadd.s32 32, %s2188_s5  ;;  %s2188_s5 = sphi %s3011_s5, %s623_s5  }
 0x323   : > { %p629_p7 = scmp.lt.s32.totalorder %s3018_s0, 383  ;;  %s3022_s11 = scalar_lea.sflag [#allocation2], %s624_s16 }
 0x325   : > { %s630_s27 = scalar_select %p629_p7, %s3018_s0, 383 }
 0x327   : > { %s631_s30 = sld [smem:[#allocation4 + %s630_s27]] }
 0x32d   : > { %p632_p11 = scmp.gt.s32.totalorder %s631_s30, 0  ;;  %p1263_p3 = scmp.lt.s32.totalorder %s631_s30, 2047 }
 0x32f   : > { %s3155_s30 = smov (!%p632_p11, %s631_s30), 0 }
 0x330   : > { %s3157_s30 = smov (!%p1263_p3, %s3155_s30), 2047 }
 0x331   : > { %2182 = dma.done.wait %s3022_s11, 96 }
 0x332   : > { %2183 = vsyncadd %s3022_s11, 4294967200  ;;  %p1370_p0 = scmp.lt.s32.totalorder %s3018_s0, 384  ;;  %s644_s12 = sshrl.u32 %s3157_s30, 3 }
 0x333   : > { %s645_s9 = sand.u32 7, %s3157_s30   ;;  %s646_s15 = smul.u32 48, %s644_s12 }
 0x334   : > { %s650_s22 = sshrl.u32 %s3018_s0, 3  ;;  %s651_s8 = sand.u32 7, %s3018_s0  }
 0x335   : > { %s652_s21 = smul.u32 48, %s650_s22  ;;  %s647_s19 = sadd.s32 %s646_s15, %s645_s9 }
 0x336   : > { %s1269_s7 = sshll.u32 %s647_s19, 4 }
 0x337   : > { %s653_s25 = sadd.s32 %s652_s21, %s651_s8  ;;  %s649_s18 = scalar_lea.hbm %s3060_s1, %s1269_s7 }
 0x338   : > { %s654_s13 = scalar_lea.vmem [#allocation5], %s653_s25  ;;  %s2130_s24 = scalar_lea.hbm %s649_s18, 96 }
 0x339   : > { %s656_s26 = sshll.u32 %s654_s13, 4  ;;  %p2131_p10 = scmp.ne.s32.totalorder %s649_s18, %s2130_s24  ;;  %s657_s26 = int_to_ptr.vmem [resolvable:$true] %s656_s26 }
 0x33a   : > { %p2135_p2 = scmp.lt.s32.totalorder %s649_s18, %s3060_s1  ;;  %p2136_p4 = scmp.lt.s32.totalorder %s2269_s6, %s2130_s24 }
 0x33b   : > { %p2132_p1 = pnand %p2131_p10, %p1370_p0 }
 0x33c   : > { %p2137_p8 = por %p2136_p4, %p2135_p2 }
 0x33d   : > { %p2133_p5 = pneg %p2132_p1 }
 0x33f   : > { %p2138_p13 = pnand %p2137_p8, %p2133_p5 }
 0x341   : > { %2141 = shalt.err (!%p2138_p13)  }
 0x342   : > { %s2142_s17 = scalar_lea.vmem %s657_s26, 96  ;;  %p2149_p11 = scmp.lt.s32.totalorder %s657_s26, %s2247_s14 }
 0x343   : > { %p2143_p9 = scmp.ne.s32.totalorder %s657_s26, %s2142_s17  ;;  %p2150_p3 = scmp.lt.s32.totalorder %s2278_s10, %s2142_s17 }
 0x345   : > { %p2144_p6 = pnand %p2143_p9, %p1370_p0  ;;  %p2151_p10 = por %p2150_p3, %p2149_p11 }
 0x347   : > { %p2145_p7 = pneg %p2144_p6 }
 0x349   : > { %p2152_p1 = pnand %p2151_p10, %p2145_p7 }
 0x34b   : > { %2155 = shalt.err (!%p2152_p1)  }
 0x34c   : > { %s2225_s23 = smov 128   ;;  %s2226_s29 = smov 1  }
 0x34d   : > { %1369 = dma.hbm_to_vmem [thread:$0]  (%p1370_p0), %s649_s18, 96, %s657_s26, %s3022_s11, %s2225_s23, %s2225_s23, %s2226_s29 }
 0x34e   : > { %s623_s5 = sadd.s32 1, %s2188_s5  }
 0x34f   : > { %p620_p5 = scmp.ge.s32.totalorder %s623_s5, 384  }
 0x350   :  { %p2157_p2 = scmp.ne.s32.totalorder (%p620_p5), %s2247_s14, %s2278_s10  ;;  %p2162_p4 = scmp.lt.s32.totalorder (%p620_p5), %s2278_s10, %s2278_s10 }
 0x351   :  { %622 = sbr.rel (!%p620_p5) target bundleno = 802 (0x322), region = 159 }
 0x352   :  { %p2163_p8 = por (%p620_p5), %p2162_p4, %p1441_p12 }
 0x354   :  { %p2164_p13 = pnand (%p620_p5), %p2163_p8, %p2157_p2 }
 0x356   :  { %2167 = shalt.err (!%p2164_p13)
}
 0x357   :  { %s2227_s16 = smov 768   ;;  %s2228_s0 = smov 48  }
 0x358   :  { %671 = dma.vmem_to_hbm [thread:$0]  %s2247_s14, 36864, %s3061_s2, [#allocation6], %s2227_s16, %s2227_s16, %s2228_s0  }
 0x359   :  { %2184 = dma.done.wait [#allocation6], 36864  }
 0x35a   :  { %2185 = vsyncadd [#allocation6], 4294930432 }
 0x35b   :  { %675 = vsyncpa [#allocation6], 1 }
 0x35c   :  { %676 = vsyncmov [#allocation2] }
 0x35f   :  { %s677_s1 = vpop.sfrf %676 }
 0x360   :  { %p1270_p0 = scmp.ne.s32.totalorder %s677_s1, 0 }
 0x362   :  { %681 = shalt.err (%p1270_p0)  }
 0x363   :  { %683 = vsyncmov [#allocation2 + $0x1] }
 0x366   :  { %s684_s6 = vpop.sfrf %683 }
 0x367   :  { %p1271_p9 = scmp.ne.s32.totalorder %s684_s6, 0 }
 0x369   :  { %688 = shalt.err (%p1271_p9)  }
 0x36a   :  { %690 = vsyncmov [#allocation2 + $0x2] }
 0x36d   :  { %s691_s10 = vpop.sfrf %690 }
 0x36e   :  { %p1272_p12 = scmp.ne.s32.totalorder %s691_s10, 0 }
 0x370   :  { %695 = shalt.err (%p1272_p12)  }
 0x371   :  { %697 = vsyncmov [#allocation2 + $0x3] }
 0x374   :  { %s698_s5 = vpop.sfrf %697 }
 0x375   :  { %p1273_p6 = scmp.ne.s32.totalorder %s698_s5, 0 }
 0x377   :  { %702 = shalt.err (%p1273_p6)  }
 0x378   :  { %704 = vsyncmov [#allocation2 + $0x4] }
 0x37b   :  { %s705_s2 = vpop.sfrf %704 }
 0x37c   :  { %p1274_p7 = scmp.ne.s32.totalorder %s705_s2, 0 }
 0x37e   :  { %709 = shalt.err (%p1274_p7)  }
 0x37f   :  { %711 = vsyncmov [#allocation2 + $0x5] }
 0x382   :  { %s712_s14 = vpop.sfrf %711 }
 0x383   :  { %p1275_p11 = scmp.ne.s32.totalorder %s712_s14, 0 }
 0x385   :  { %716 = shalt.err (%p1275_p11)  }
 0x386   :  { %718 = vsyncmov [#allocation2 + $0x6] }
 0x389   :  { %s719_s11 = vpop.sfrf %718 }
 0x38a   :  { %p1276_p3 = scmp.ne.s32.totalorder %s719_s11, 0 }
 0x38c   :  { %723 = shalt.err (%p1276_p3)  }
 0x38d   :  { %725 = vsyncmov [#allocation2 + $0x7] }
 0x390   :  { %s726_s12 = vpop.sfrf %725 }
 0x391   :  { %p1277_p10 = scmp.ne.s32.totalorder %s726_s12, 0 }
 0x393   :  { %730 = shalt.err (%p1277_p10)  }
 0x394   :  { %732 = vsyncmov [#allocation2 + $0x8] }
 0x397   :  { %s733_s9 = vpop.sfrf %732 }
 0x398   :  { %p1278_p1 = scmp.ne.s32.totalorder %s733_s9, 0 }
 0x39a   :  { %737 = shalt.err (%p1278_p1)  }
 0x39b   :  { %739 = vsyncmov [#allocation2 + $0x9] }
 0x39e   :  { %s740_s15 = vpop.sfrf %739 }
 0x39f   :  { %p1279_p5 = scmp.ne.s32.totalorder %s740_s15, 0 }
 0x3a1   :  { %744 = shalt.err (%p1279_p5)  }
 0x3a2   :  { %746 = vsyncmov [#allocation2 + $0xa] }
 0x3a5   :  { %s747_s22 = vpop.sfrf %746 }
 0x3a6   :  { %p1280_p2 = scmp.ne.s32.totalorder %s747_s22, 0 }
 0x3a8   :  { %751 = shalt.err (%p1280_p2)  }
 0x3a9   :  { %753 = vsyncmov [#allocation2 + $0xb] }
 0x3ac   :  { %s754_s8 = vpop.sfrf %753 }
 0x3ad   :  { %p1281_p4 = scmp.ne.s32.totalorder %s754_s8, 0 }
 0x3af   :  { %758 = shalt.err (%p1281_p4)  }
 0x3b0   :  { %760 = vsyncmov [#allocation2 + $0xc] }
 0x3b3   :  { %s761_s21 = vpop.sfrf %760 }
 0x3b4   :  { %p1282_p8 = scmp.ne.s32.totalorder %s761_s21, 0 }
 0x3b6   :  { %765 = shalt.err (%p1282_p8)  }
 0x3b7   :  { %767 = vsyncmov [#allocation2 + $0xd] }
 0x3ba   :  { %s768_s19 = vpop.sfrf %767 }
 0x3bb   :  { %p1283_p13 = scmp.ne.s32.totalorder %s768_s19, 0 }
 0x3bd   :  { %772 = shalt.err (%p1283_p13)  }
 0x3be   :  { %774 = vsyncmov [#allocation2 + $0xe] }
 0x3c1   :  { %s775_s7 = vpop.sfrf %774 }
 0x3c2   :  { %p1284_p0 = scmp.ne.s32.totalorder %s775_s7, 0 }
 0x3c4   :  { %779 = shalt.err (%p1284_p0)  }
 0x3c5   :  { %781 = vsyncmov [#allocation2 + $0xf] }
 0x3c8   :  { %s782_s25 = vpop.sfrf %781 }
 0x3c9   :  { %p1285_p9 = scmp.ne.s32.totalorder %s782_s25, 0 }
 0x3cb   :  { %786 = shalt.err (%p1285_p9)  }
 0x3cc   :  { %788 = vsyncmov [#allocation2 + $0x10] }
 0x3cf   :  { %s789_s4 = vpop.sfrf %788 }
 0x3d0   :  { %p1286_p12 = scmp.ne.s32.totalorder %s789_s4, 0 }
 0x3d2   :  { %793 = shalt.err (%p1286_p12)  }
 0x3d3   :  { %795 = vsyncmov [#allocation2 + $0x11] }
 0x3d6   :  { %s796_s28 = vpop.sfrf %795 }
 0x3d7   :  { %p1287_p6 = scmp.ne.s32.totalorder %s796_s28, 0 }
 0x3d9   :  { %800 = shalt.err (%p1287_p6)  }
 0x3da   :  { %802 = vsyncmov [#allocation2 + $0x12] }
 0x3dd   :  { %s803_s18 = vpop.sfrf %802 }
 0x3de   :  { %p1288_p7 = scmp.ne.s32.totalorder %s803_s18, 0 }
 0x3e0   :  { %807 = shalt.err (%p1288_p7)  }
 0x3e1   :  { %809 = vsyncmov [#allocation2 + $0x13] }
 0x3e4   :  { %s810_s13 = vpop.sfrf %809 }
 0x3e5   :  { %p1289_p11 = scmp.ne.s32.totalorder %s810_s13, 0 }
 0x3e7   :  { %814 = shalt.err (%p1289_p11)  }
 0x3e8   :  { %816 = vsyncmov [#allocation2 + $0x14] }
 0x3eb   :  { %s817_s26 = vpop.sfrf %816 }
 0x3ec   :  { %p1290_p3 = scmp.ne.s32.totalorder %s817_s26, 0 }
 0x3ee   :  { %821 = shalt.err (%p1290_p3)  }
 0x3ef   :  { %823 = vsyncmov [#allocation2 + $0x15] }
 0x3f2   :  { %s824_s24 = vpop.sfrf %823 }
 0x3f3   :  { %p1291_p10 = scmp.ne.s32.totalorder %s824_s24, 0 }
 0x3f5   :  { %828 = shalt.err (%p1291_p10)  }
 0x3f6   :  { %830 = vsyncmov [#allocation2 + $0x16] }
 0x3f9   :  { %s831_s20 = vpop.sfrf %830 }
 0x3fa   :  { %p1292_p1 = scmp.ne.s32.totalorder %s831_s20, 0 }
 0x3fc   :  { %835 = shalt.err (%p1292_p1)  }
 0x3fd   :  { %837 = vsyncmov [#allocation2 + $0x17] }
 0x400   :  { %s838_s3 = vpop.sfrf %837 }
 0x401   :  { %p1293_p5 = scmp.ne.s32.totalorder %s838_s3, 0 }
 0x403   :  { %842 = shalt.err (%p1293_p5)  }
 0x404   :  { %844 = vsyncmov [#allocation2 + $0x18] }
 0x407   :  { %s845_s17 = vpop.sfrf %844 }
 0x408   :  { %p1294_p2 = scmp.ne.s32.totalorder %s845_s17, 0 }
 0x40a   :  { %849 = shalt.err (%p1294_p2)  }
 0x40b   :  { %851 = vsyncmov [#allocation2 + $0x19] }
 0x40e   :  { %s852_s23 = vpop.sfrf %851 }
 0x40f   :  { %p1295_p4 = scmp.ne.s32.totalorder %s852_s23, 0 }
 0x411   :  { %856 = shalt.err (%p1295_p4)  }
 0x412   :  { %858 = vsyncmov [#allocation2 + $0x1a] }
 0x415   :  { %s859_s29 = vpop.sfrf %858 }
 0x416   :  { %p1296_p8 = scmp.ne.s32.totalorder %s859_s29, 0 }
 0x418   :  { %863 = shalt.err (%p1296_p8)  }
 0x419   :  { %865 = vsyncmov [#allocation2 + $0x1b] }
 0x41c   :  { %s866_s16 = vpop.sfrf %865 }
 0x41d   :  { %p1297_p13 = scmp.ne.s32.totalorder %s866_s16, 0 }
 0x41f   :  { %870 = shalt.err (%p1297_p13)  }
 0x420   :  { %872 = vsyncmov [#allocation2 + $0x1c] }
 0x423   :  { %s873_s0 = vpop.sfrf %872 }
 0x424   :  { %p1298_p0 = scmp.ne.s32.totalorder %s873_s0, 0 }
 0x426   :  { %877 = shalt.err (%p1298_p0)  }
 0x427   :  { %879 = vsyncmov [#allocation2 + $0x1d] }
 0x42a   :  { %s880_s27 = vpop.sfrf %879 }
 0x42b   :  { %p1299_p9 = scmp.ne.s32.totalorder %s880_s27, 0 }
 0x42d   :  { %884 = shalt.err (%p1299_p9)  }
 0x42e   :  { %886 = vsyncmov [#allocation2 + $0x1e] }
 0x431   :  { %s887_s30 = vpop.sfrf %886 }
 0x432   :  { %p1300_p12 = scmp.ne.s32.totalorder %s887_s30, 0 }
 0x434   :  { %891 = shalt.err (%p1300_p12)  }
 0x435   :  { %893 = vsyncmov [#allocation2 + $0x1f] }
 0x438   :  { %s894_s1 = vpop.sfrf %893 }
 0x439   :  { %p1301_p6 = scmp.ne.s32.totalorder %s894_s1, 0 }
 0x43b   :  { %898 = shalt.err (%p1301_p6)  }

</bundles_post_ra>
